<compile_context>
chip_gen: v6e
topology: v6e:2x2x1
jax: 0.10.0
libtpu: 0.0.40
codegen_flags: <defaults>
</compile_context>

<pallas_src>
import jax
import jax.numpy as jnp
from jax import lax
from jax.experimental import pallas as pl
from jax.experimental.pallas import tpu as pltpu


def gru_encoder_kernel(emb_ref,      # (S, B_pad, E_pad)  f32, dropout already applied
                       w_ih_ref,     # (E_pad, 3*H_pad)   fused input->hidden weights (r,z,n)
                       w_hh_ref,     # (H_pad, 3*H_pad)   fused hidden->hidden weights (r,z,n)
                       b_x_ref,      # (1, 3*H_pad)       [b_ir+b_hr, b_iz+b_hz, b_in]
                       b_hn_ref,     # (1, H_pad)         b_hn (stays inside the r*(...) term)
                       out_ref,      # (B_pad, H_pad)     final hidden state
                       xw_ref):      # VMEM scratch (S*B_pad, 3*H_pad) hoisted input projections
    S, Bp, Ep = emb_ref.shape
    Hp = w_hh_ref.shape[0]

    # ---- Prologue: hoisted, fused input projection for ALL timesteps (one big matmul).
    x2d = emb_ref[...].reshape(S * Bp, Ep)                               # (S*Bp, Ep)
    xw_ref[...] = (jnp.dot(x2d, w_ih_ref[...],
                           preferred_element_type=jnp.float32)
                   + b_x_ref[...])                                       # (S*Bp, 3*Hp)

    w_hh = w_hh_ref[...]
    b_hn = b_hn_ref[...]

    # ---- Serial GRU recurrence over time (only h @ W_hh + gates on the critical path).
    def step(t, h):
        row = pl.multiple_of(t * Bp, 8)
        xw_t = xw_ref[pl.ds(row, Bp), :]                                 # (Bp, 3*Hp)
        hh = jnp.dot(h, w_hh, preferred_element_type=jnp.float32)        # (Bp, 3*Hp)
        r = jax.nn.sigmoid(xw_t[:, 0 * Hp:1 * Hp] + hh[:, 0 * Hp:1 * Hp])
        z = jax.nn.sigmoid(xw_t[:, 1 * Hp:2 * Hp] + hh[:, 1 * Hp:2 * Hp])
        n = jnp.tanh(xw_t[:, 2 * Hp:3 * Hp] + r * (hh[:, 2 * Hp:3 * Hp] + b_hn))
        return (1.0 - z) * n + z * h

    h0 = jnp.zeros((Bp, Hp), jnp.float32)                                # PyTorch default h0 = 0
    h = lax.fori_loop(0, S, step, h0, unroll=True)
    out_ref[...] = h.astype(out_ref.dtype)


def _round_up(x, m):
    return (x + m - 1) // m * m


def encoder_forward(src, emb_table, w_ih, w_hh, b_ih, b_hh, *,
                    dropout_p=0.0, dropout_key=None):
    """src: (S, B) int32.  Returns (B, H) final GRU hidden state."""
    S, B = src.shape
    E = emb_table.shape[1]
    H = w_hh.shape[-1]
    Bp = _round_up(B, 8)      # sublane multiple
    Ep = _round_up(E, 128)    # lane multiple (contraction dim)
    Hp = _round_up(H, 128)    # lane multiple (per-gate block)

    # Embedding lookup (gather) stays in plain JAX glue.
    embedded = jnp.take(emb_table, src, axis=0).astype(jnp.float32)      # (S, B, E)

    # Dropout (training mode) on the embedded input, done in JAX glue.
    # TODO(synk): PyTorch's dropout RNG stream cannot be reproduced bit-exactly; we use
    #             jax.random with a deterministic key (in-kernel pltpu.prng_seed does
    #             not lower in interpret/CPU mode).
    if dropout_p > 0.0:
        if dropout_key is None:
            dropout_key = jax.random.PRNGKey(0)
        keep = jax.random.bernoulli(dropout_key, 1.0 - dropout_p, embedded.shape)
        embedded = jnp.where(keep, embedded * (1.0 / (1.0 - dropout_p)), 0.0)

    # Pad to (8, 128)-friendly shapes.
    emb_p = jnp.zeros((S, Bp, Ep), jnp.float32).at[:, :B, :E].set(embedded)

    # Fuse the three gate matmuls into single lane-dense projections.
    w_ih_f = jnp.zeros((Ep, 3 * Hp), jnp.float32)
    w_hh_f = jnp.zeros((Hp, 3 * Hp), jnp.float32)
    for g in range(3):
        w_ih_f = w_ih_f.at[:E, g * Hp:g * Hp + H].set(w_ih[g])
        w_hh_f = w_hh_f.at[:H, g * Hp:g * Hp + H].set(w_hh[g])

    # Pre-summed biases: r/z gates take b_ih+b_hh; the n gate's x-side bias is b_in,
    # and b_hn stays separate (it sits inside the r*(...) term).
    b_x = jnp.zeros((1, 3 * Hp), jnp.float32)
    b_x = b_x.at[:, 0 * Hp:0 * Hp + H].set(b_ih[0] + b_hh[0])
    b_x = b_x.at[:, 1 * Hp:1 * Hp + H].set(b_ih[1] + b_hh[1])
    b_x = b_x.at[:, 2 * Hp:2 * Hp + H].set(b_ih[2])
    b_hn = jnp.zeros((1, Hp), jnp.float32).at[:, :H].set(b_hh[2])

    out = pl.pallas_call(
        gru_encoder_kernel,
        out_shape=jax.ShapeDtypeStruct((Bp, Hp), jnp.float32),
        scratch_shapes=[pltpu.VMEM((S * Bp, 3 * Hp), jnp.float32)],
    )(emb_p, w_ih_f, w_hh_f, b_x, b_hn)

    return out[:B, :H]


def gru_reference(embedded, w_ih, w_hh, b_ih, b_hh):
    """Pure-JAX reference of the GRU (no dropout), for correctness check."""
    B = embedded.shape[1]
    H = w_hh.shape[-1]

    def step(h, x):
        r = jax.nn.sigmoid(x @ w_ih[0] + b_ih[0] + h @ w_hh[0] + b_hh[0])
        z = jax.nn.sigmoid(x @ w_ih[1] + b_ih[1] + h @ w_hh[1] + b_hh[1])
        n = jnp.tanh(x @ w_ih[2] + b_ih[2] + r * (h @ w_hh[2] + b_hh[2]))
        return (1.0 - z) * n + z * h, None

    h0 = jnp.zeros((B, H), jnp.float32)
    h, _ = jax.lax.scan(step, h0, embedded)
    return h


if __name__ == "__main__":
    # Small, module-consistent shapes (module defaults are E=128, H=512; scaled down).
    VOCAB, E, H = 50, 32, 64          # input_size, embedding_size, hidden_size
    S, B = 8, 4                       # seq_len, batch
    DROPOUT = 0.5

    key = jax.random.PRNGKey(0)
    k_emb, k_wih, k_whh, k_bih, k_bhh, k_src, k_drop = jax.random.split(key, 7)

    # PyTorch-style init: GRU params ~ U(-1/sqrt(H), 1/sqrt(H)).
    bound = 1.0 / (H ** 0.5)
    emb_table = jax.random.normal(k_emb, (VOCAB, E), dtype=jnp.float32)
    w_ih = jax.random.uniform(k_wih, (3, E, H), jnp.float32, -bound, bound)
    w_hh = jax.random.uniform(k_whh, (3, H, H), jnp.float32, -bound, bound)
    b_ih = jax.random.uniform(k_bih, (3, 1, H), jnp.float32, -bound, bound)
    b_hh = jax.random.uniform(k_bhh, (3, 1, H), jnp.float32, -bound, bound)

    src = jax.random.randint(k_src, (S, B), 0, VOCAB, dtype=jnp.int32)

    # 1) Correctness check vs pure-JAX GRU with dropout disabled (eval-mode path).
    out_eval = encoder_forward(src, emb_table, w_ih, w_hh, b_ih, b_hh, dropout_p=0.0)
    out_eval = jax.block_until_ready(out_eval)
    embedded = jnp.take(emb_table, src, axis=0).astype(jnp.float32)
    ref = jax.block_until_ready(gru_reference(embedded, w_ih, w_hh, b_ih, b_hh))
    assert out_eval.shape == (B, H)
    # Tolerance is loose because TPU default matmul precision (bf16 passes) differs
    # slightly between the fused-kernel and per-gate reference matmuls.
    assert jnp.allclose(out_eval, ref, atol=1e-2, rtol=1e-2), "mismatch vs reference GRU"

    # 2) Training-mode forward (dropout active).
    out_train = encoder_forward(src, emb_table, w_ih, w_hh, b_ih, b_hh,
                                dropout_p=DROPOUT, dropout_key=k_drop)
    out_train = jax.block_until_ready(out_train)
    assert out_train.shape == (B, H)
    assert bool(jnp.all(jnp.isfinite(out_train)))

    print("KERNEL_OK")
</pallas_src>

<mosaic_0001>
module attributes {stable_mosaic.version = 11 : i64} {
  func.func @gru_encoder_kernel(%arg0: memref<8x8x128xf32, #tpu.memory_space<vmem>>, %arg1: memref<128x384xf32, #tpu.memory_space<vmem>>, %arg2: memref<128x384xf32, #tpu.memory_space<vmem>>, %arg3: memref<1x384xf32, #tpu.memory_space<vmem>>, %arg4: memref<1x128xf32, #tpu.memory_space<vmem>>, %arg5: memref<8x128xf32, #tpu.memory_space<vmem>>, %arg6: memref<64x384xf32, #tpu.memory_space<vmem>>) attributes {dimension_semantics = [], scalar_prefetch = 0 : i64, scratch_operands = 1 : i64, tpu.core_type = #tpu.core_type<tc>} {
    %c0 = arith.constant 0 : index
    %c0_0 = arith.constant 0 : index
    %c0_1 = arith.constant 0 : index
    %0 = vector.load %arg0[%c0, %c0_0, %c0_1] : memref<8x8x128xf32, #tpu.memory_space<vmem>>, vector<8x8x128xf32>
    %1 = vector.shape_cast %0 : vector<8x8x128xf32> to vector<64x128xf32>
    %c0_2 = arith.constant 0 : index
    %c0_3 = arith.constant 0 : index
    %2 = vector.load %arg1[%c0_2, %c0_3] : memref<128x384xf32, #tpu.memory_space<vmem>>, vector<128x384xf32>
    %cst = arith.constant dense<0.000000e+00> : vector<64x384xf32>
    %3 = tpu.matmul %1, %2, %cst {dimension_numbers = #tpu.dot_dimension_numbers<[1], [0], [0], [1], [0, 0, 1, 1], [], []>} : vector<64x128xf32>, vector<128x384xf32>, vector<64x384xf32> -> vector<64x384xf32>
    %c0_4 = arith.constant 0 : index
    %c0_5 = arith.constant 0 : index
    %4 = vector.load %arg3[%c0_4, %c0_5] : memref<1x384xf32, #tpu.memory_space<vmem>>, vector<1x384xf32>
    %5 = vector.broadcast %4 : vector<1x384xf32> to vector<64x384xf32>
    %6 = arith.addf %3, %5 : vector<64x384xf32>
    %c0_6 = arith.constant 0 : index
    %c0_7 = arith.constant 0 : index
    %7 = vector.load %arg6[%c0_6, %c0_7] : memref<64x384xf32, #tpu.memory_space<vmem>>, vector<64x384xf32>
    tpu.vector_store %arg6[%c0_6, %c0_7], %6 {strides = array<i32>} : memref<64x384xf32, #tpu.memory_space<vmem>>, vector<64x384xf32>,
    %c0_8 = arith.constant 0 : index
    %c0_9 = arith.constant 0 : index
    %8 = vector.load %arg2[%c0_8, %c0_9] : memref<128x384xf32, #tpu.memory_space<vmem>>, vector<128x384xf32>
    %c0_10 = arith.constant 0 : index
    %c0_11 = arith.constant 0 : index
    %9 = vector.load %arg4[%c0_10, %c0_11] : memref<1x128xf32, #tpu.memory_space<vmem>>, vector<1x128xf32>
    %cst_12 = arith.constant 0.000000e+00 : f32
    %10 = vector.broadcast %cst_12 : f32 to vector<8x128xf32>
    %c0_i32 = arith.constant 0 : i32
    %c8_i32 = arith.constant 8 : i32
    %11 = arith.muli %c0_i32, %c8_i32 : i32
    %12 = tpu.assume_multiple %11, 8 : i32
    %13 = arith.index_cast %12 : i32 to index
    %c0_13 = arith.constant 0 : index
    %14 = vector.load %arg6[%13, %c0_13] : memref<64x384xf32, #tpu.memory_space<vmem>>, vector<8x384xf32>
    %cst_14 = arith.constant dense<0.000000e+00> : vector<8x384xf32>
    %15 = tpu.matmul %10, %8, %cst_14 {dimension_numbers = #tpu.dot_dimension_numbers<[1], [0], [0], [1], [0, 0, 1, 1], [], []>} : vector<8x128xf32>, vector<128x384xf32>, vector<8x384xf32> -> vector<8x384xf32>
    %16 = vector.extract_strided_slice %14 {offsets = [0, 0], sizes = [8, 128], strides = [1, 1]} : vector<8x384xf32> to vector<8x128xf32>
    %17 = vector.extract_strided_slice %15 {offsets = [0, 0], sizes = [8, 128], strides = [1, 1]} : vector<8x384xf32> to vector<8x128xf32>
    %18 = arith.addf %16, %17 : vector<8x128xf32>
    %19 = arith.negf %18 : vector<8x128xf32>
    %20 = math.exp %19 : vector<8x128xf32>
    %cst_15 = arith.constant 1.000000e+00 : f32
    %21 = vector.broadcast %cst_15 : f32 to vector<8x128xf32>
    %22 = arith.addf %21, %20 : vector<8x128xf32>
    %23 = arith.divf %21, %22 : vector<8x128xf32>
    %24 = vector.extract_strided_slice %14 {offsets = [0, 128], sizes = [8, 128], strides = [1, 1]} : vector<8x384xf32> to vector<8x128xf32>
    %25 = vector.extract_strided_slice %15 {offsets = [0, 128], sizes = [8, 128], strides = [1, 1]} : vector<8x384xf32> to vector<8x128xf32>
    %26 = arith.addf %24, %25 : vector<8x128xf32>
    %27 = arith.negf %26 : vector<8x128xf32>
    %28 = math.exp %27 : vector<8x128xf32>
    %cst_16 = arith.constant 1.000000e+00 : f32
    %29 = vector.broadcast %cst_16 : f32 to vector<8x128xf32>
    %30 = arith.addf %29, %28 : vector<8x128xf32>
    %31 = arith.divf %29, %30 : vector<8x128xf32>
    %32 = vector.extract_strided_slice %14 {offsets = [0, 256], sizes = [8, 128], strides = [1, 1]} : vector<8x384xf32> to vector<8x128xf32>
    %33 = vector.extract_strided_slice %15 {offsets = [0, 256], sizes = [8, 128], strides = [1, 1]} : vector<8x384xf32> to vector<8x128xf32>
    %34 = vector.broadcast %9 : vector<1x128xf32> to vector<8x128xf32>
    %35 = arith.addf %33, %34 : vector<8x128xf32>
    %36 = arith.mulf %23, %35 : vector<8x128xf32>
    %37 = arith.addf %32, %36 : vector<8x128xf32>
    %38 = math.tanh %37 : vector<8x128xf32>
    %cst_17 = arith.constant 1.000000e+00 : f32
    %39 = vector.broadcast %cst_17 : f32 to vector<8x128xf32>
    %40 = arith.subf %39, %31 : vector<8x128xf32>
    %41 = arith.mulf %40, %38 : vector<8x128xf32>
    %42 = arith.mulf %31, %10 : vector<8x128xf32>
    %43 = arith.addf %41, %42 : vector<8x128xf32>
    %c1_i32 = arith.constant 1 : i32
    %c8_i32_18 = arith.constant 8 : i32
    %44 = arith.muli %c1_i32, %c8_i32_18 : i32
    %45 = tpu.assume_multiple %44, 8 : i32
    %46 = arith.index_cast %45 : i32 to index
    %c0_19 = arith.constant 0 : index
    %47 = vector.load %arg6[%46, %c0_19] : memref<64x384xf32, #tpu.memory_space<vmem>>, vector<8x384xf32>
    %cst_20 = arith.constant dense<0.000000e+00> : vector<8x384xf32>
    %48 = tpu.matmul %43, %8, %cst_20 {dimension_numbers = #tpu.dot_dimension_numbers<[1], [0], [0], [1], [0, 0, 1, 1], [], []>} : vector<8x128xf32>, vector<128x384xf32>, vector<8x384xf32> -> vector<8x384xf32>
    %49 = vector.extract_strided_slice %47 {offsets = [0, 0], sizes = [8, 128], strides = [1, 1]} : vector<8x384xf32> to vector<8x128xf32>
    %50 = vector.extract_strided_slice %48 {offsets = [0, 0], sizes = [8, 128], strides = [1, 1]} : vector<8x384xf32> to vector<8x128xf32>
    %51 = arith.addf %49, %50 : vector<8x128xf32>
    %52 = arith.negf %51 : vector<8x128xf32>
    %53 = math.exp %52 : vector<8x128xf32>
    %cst_21 = arith.constant 1.000000e+00 : f32
    %54 = vector.broadcast %cst_21 : f32 to vector<8x128xf32>
    %55 = arith.addf %54, %53 : vector<8x128xf32>
    %56 = arith.divf %54, %55 : vector<8x128xf32>
    %57 = vector.extract_strided_slice %47 {offsets = [0, 128], sizes = [8, 128], strides = [1, 1]} : vector<8x384xf32> to vector<8x128xf32>
    %58 = vector.extract_strided_slice %48 {offsets = [0, 128], sizes = [8, 128], strides = [1, 1]} : vector<8x384xf32> to vector<8x128xf32>
    %59 = arith.addf %57, %58 : vector<8x128xf32>
    %60 = arith.negf %59 : vector<8x128xf32>
    %61 = math.exp %60 : vector<8x128xf32>
    %cst_22 = arith.constant 1.000000e+00 : f32
    %62 = vector.broadcast %cst_22 : f32 to vector<8x128xf32>
    %63 = arith.addf %62, %61 : vector<8x128xf32>
    %64 = arith.divf %62, %63 : vector<8x128xf32>
    %65 = vector.extract_strided_slice %47 {offsets = [0, 256], sizes = [8, 128], strides = [1, 1]} : vector<8x384xf32> to vector<8x128xf32>
    %66 = vector.extract_strided_slice %48 {offsets = [0, 256], sizes = [8, 128], strides = [1, 1]} : vector<8x384xf32> to vector<8x128xf32>
    %67 = vector.broadcast %9 : vector<1x128xf32> to vector<8x128xf32>
    %68 = arith.addf %66, %67 : vector<8x128xf32>
    %69 = arith.mulf %56, %68 : vector<8x128xf32>
    %70 = arith.addf %65, %69 : vector<8x128xf32>
    %71 = math.tanh %70 : vector<8x128xf32>
    %cst_23 = arith.constant 1.000000e+00 : f32
    %72 = vector.broadcast %cst_23 : f32 to vector<8x128xf32>
    %73 = arith.subf %72, %64 : vector<8x128xf32>
    %74 = arith.mulf %73, %71 : vector<8x128xf32>
    %75 = arith.mulf %64, %43 : vector<8x128xf32>
    %76 = arith.addf %74, %75 : vector<8x128xf32>
    %c2_i32 = arith.constant 2 : i32
    %c8_i32_24 = arith.constant 8 : i32
    %77 = arith.muli %c2_i32, %c8_i32_24 : i32
    %78 = tpu.assume_multiple %77, 8 : i32
    %79 = arith.index_cast %78 : i32 to index
    %c0_25 = arith.constant 0 : index
    %80 = vector.load %arg6[%79, %c0_25] : memref<64x384xf32, #tpu.memory_space<vmem>>, vector<8x384xf32>
    %cst_26 = arith.constant dense<0.000000e+00> : vector<8x384xf32>
    %81 = tpu.matmul %76, %8, %cst_26 {dimension_numbers = #tpu.dot_dimension_numbers<[1], [0], [0], [1], [0, 0, 1, 1], [], []>} : vector<8x128xf32>, vector<128x384xf32>, vector<8x384xf32> -> vector<8x384xf32>
    %82 = vector.extract_strided_slice %80 {offsets = [0, 0], sizes = [8, 128], strides = [1, 1]} : vector<8x384xf32> to vector<8x128xf32>
    %83 = vector.extract_strided_slice %81 {offsets = [0, 0], sizes = [8, 128], strides = [1, 1]} : vector<8x384xf32> to vector<8x128xf32>
    %84 = arith.addf %82, %83 : vector<8x128xf32>
    %85 = arith.negf %84 : vector<8x128xf32>
    %86 = math.exp %85 : vector<8x128xf32>
    %cst_27 = arith.constant 1.000000e+00 : f32
    %87 = vector.broadcast %cst_27 : f32 to vector<8x128xf32>
    %88 = arith.addf %87, %86 : vector<8x128xf32>
    %89 = arith.divf %87, %88 : vector<8x128xf32>
    %90 = vector.extract_strided_slice %80 {offsets = [0, 128], sizes = [8, 128], strides = [1, 1]} : vector<8x384xf32> to vector<8x128xf32>
    %91 = vector.extract_strided_slice %81 {offsets = [0, 128], sizes = [8, 128], strides = [1, 1]} : vector<8x384xf32> to vector<8x128xf32>
    %92 = arith.addf %90, %91 : vector<8x128xf32>
    %93 = arith.negf %92 : vector<8x128xf32>
    %94 = math.exp %93 : vector<8x128xf32>
    %cst_28 = arith.constant 1.000000e+00 : f32
    %95 = vector.broadcast %cst_28 : f32 to vector<8x128xf32>
    %96 = arith.addf %95, %94 : vector<8x128xf32>
    %97 = arith.divf %95, %96 : vector<8x128xf32>
    %98 = vector.extract_strided_slice %80 {offsets = [0, 256], sizes = [8, 128], strides = [1, 1]} : vector<8x384xf32> to vector<8x128xf32>
    %99 = vector.extract_strided_slice %81 {offsets = [0, 256], sizes = [8, 128], strides = [1, 1]} : vector<8x384xf32> to vector<8x128xf32>
    %100 = vector.broadcast %9 : vector<1x128xf32> to vector<8x128xf32>
    %101 = arith.addf %99, %100 : vector<8x128xf32>
    %102 = arith.mulf %89, %101 : vector<8x128xf32>
    %103 = arith.addf %98, %102 : vector<8x128xf32>
    %104 = math.tanh %103 : vector<8x128xf32>
    %cst_29 = arith.constant 1.000000e+00 : f32
    %105 = vector.broadcast %cst_29 : f32 to vector<8x128xf32>
    %106 = arith.subf %105, %97 : vector<8x128xf32>
    %107 = arith.mulf %106, %104 : vector<8x128xf32>
    %108 = arith.mulf %97, %76 : vector<8x128xf32>
    %109 = arith.addf %107, %108 : vector<8x128xf32>
    %c3_i32 = arith.constant 3 : i32
    %c8_i32_30 = arith.constant 8 : i32
    %110 = arith.muli %c3_i32, %c8_i32_30 : i32
    %111 = tpu.assume_multiple %110, 8 : i32
    %112 = arith.index_cast %111 : i32 to index
    %c0_31 = arith.constant 0 : index
    %113 = vector.load %arg6[%112, %c0_31] : memref<64x384xf32, #tpu.memory_space<vmem>>, vector<8x384xf32>
    %cst_32 = arith.constant dense<0.000000e+00> : vector<8x384xf32>
    %114 = tpu.matmul %109, %8, %cst_32 {dimension_numbers = #tpu.dot_dimension_numbers<[1], [0], [0], [1], [0, 0, 1, 1], [], []>} : vector<8x128xf32>, vector<128x384xf32>, vector<8x384xf32> -> vector<8x384xf32>
    %115 = vector.extract_strided_slice %113 {offsets = [0, 0], sizes = [8, 128], strides = [1, 1]} : vector<8x384xf32> to vector<8x128xf32>
    %116 = vector.extract_strided_slice %114 {offsets = [0, 0], sizes = [8, 128], strides = [1, 1]} : vector<8x384xf32> to vector<8x128xf32>
    %117 = arith.addf %115, %116 : vector<8x128xf32>
    %118 = arith.negf %117 : vector<8x128xf32>
    %119 = math.exp %118 : vector<8x128xf32>
    %cst_33 = arith.constant 1.000000e+00 : f32
    %120 = vector.broadcast %cst_33 : f32 to vector<8x128xf32>
    %121 = arith.addf %120, %119 : vector<8x128xf32>
    %122 = arith.divf %120, %121 : vector<8x128xf32>
    %123 = vector.extract_strided_slice %113 {offsets = [0, 128], sizes = [8, 128], strides = [1, 1]} : vector<8x384xf32> to vector<8x128xf32>
    %124 = vector.extract_strided_slice %114 {offsets = [0, 128], sizes = [8, 128], strides = [1, 1]} : vector<8x384xf32> to vector<8x128xf32>
    %125 = arith.addf %123, %124 : vector<8x128xf32>
    %126 = arith.negf %125 : vector<8x128xf32>
    %127 = math.exp %126 : vector<8x128xf32>
    %cst_34 = arith.constant 1.000000e+00 : f32
    %128 = vector.broadcast %cst_34 : f32 to vector<8x128xf32>
    %129 = arith.addf %128, %127 : vector<8x128xf32>
    %130 = arith.divf %128, %129 : vector<8x128xf32>
    %131 = vector.extract_strided_slice %113 {offsets = [0, 256], sizes = [8, 128], strides = [1, 1]} : vector<8x384xf32> to vector<8x128xf32>
    %132 = vector.extract_strided_slice %114 {offsets = [0, 256], sizes = [8, 128], strides = [1, 1]} : vector<8x384xf32> to vector<8x128xf32>
    %133 = vector.broadcast %9 : vector<1x128xf32> to vector<8x128xf32>
    %134 = arith.addf %132, %133 : vector<8x128xf32>
    %135 = arith.mulf %122, %134 : vector<8x128xf32>
    %136 = arith.addf %131, %135 : vector<8x128xf32>
    %137 = math.tanh %136 : vector<8x128xf32>
    %cst_35 = arith.constant 1.000000e+00 : f32
    %138 = vector.broadcast %cst_35 : f32 to vector<8x128xf32>
    %139 = arith.subf %138, %130 : vector<8x128xf32>
    %140 = arith.mulf %139, %137 : vector<8x128xf32>
    %141 = arith.mulf %130, %109 : vector<8x128xf32>
    %142 = arith.addf %140, %141 : vector<8x128xf32>
    %c4_i32 = arith.constant 4 : i32
    %c8_i32_36 = arith.constant 8 : i32
    %143 = arith.muli %c4_i32, %c8_i32_36 : i32
    %144 = tpu.assume_multiple %143, 8 : i32
    %145 = arith.index_cast %144 : i32 to index
    %c0_37 = arith.constant 0 : index
    %146 = vector.load %arg6[%145, %c0_37] : memref<64x384xf32, #tpu.memory_space<vmem>>, vector<8x384xf32>
    %cst_38 = arith.constant dense<0.000000e+00> : vector<8x384xf32>
    %147 = tpu.matmul %142, %8, %cst_38 {dimension_numbers = #tpu.dot_dimension_numbers<[1], [0], [0], [1], [0, 0, 1, 1], [], []>} : vector<8x128xf32>, vector<128x384xf32>, vector<8x384xf32> -> vector<8x384xf32>
    %148 = vector.extract_strided_slice %146 {offsets = [0, 0], sizes = [8, 128], strides = [1, 1]} : vector<8x384xf32> to vector<8x128xf32>
    %149 = vector.extract_strided_slice %147 {offsets = [0, 0], sizes = [8, 128], strides = [1, 1]} : vector<8x384xf32> to vector<8x128xf32>
    %150 = arith.addf %148, %149 : vector<8x128xf32>
    %151 = arith.negf %150 : vector<8x128xf32>
    %152 = math.exp %151 : vector<8x128xf32>
    %cst_39 = arith.constant 1.000000e+00 : f32
    %153 = vector.broadcast %cst_39 : f32 to vector<8x128xf32>
    %154 = arith.addf %153, %152 : vector<8x128xf32>
    %155 = arith.divf %153, %154 : vector<8x128xf32>
    %156 = vector.extract_strided_slice %146 {offsets = [0, 128], sizes = [8, 128], strides = [1, 1]} : vector<8x384xf32> to vector<8x128xf32>
    %157 = vector.extract_strided_slice %147 {offsets = [0, 128], sizes = [8, 128], strides = [1, 1]} : vector<8x384xf32> to vector<8x128xf32>
    %158 = arith.addf %156, %157 : vector<8x128xf32>
    %159 = arith.negf %158 : vector<8x128xf32>
    %160 = math.exp %159 : vector<8x128xf32>
    %cst_40 = arith.constant 1.000000e+00 : f32
    %161 = vector.broadcast %cst_40 : f32 to vector<8x128xf32>
    %162 = arith.addf %161, %160 : vector<8x128xf32>
    %163 = arith.divf %161, %162 : vector<8x128xf32>
    %164 = vector.extract_strided_slice %146 {offsets = [0, 256], sizes = [8, 128], strides = [1, 1]} : vector<8x384xf32> to vector<8x128xf32>
    %165 = vector.extract_strided_slice %147 {offsets = [0, 256], sizes = [8, 128], strides = [1, 1]} : vector<8x384xf32> to vector<8x128xf32>
    %166 = vector.broadcast %9 : vector<1x128xf32> to vector<8x128xf32>
    %167 = arith.addf %165, %166 : vector<8x128xf32>
    %168 = arith.mulf %155, %167 : vector<8x128xf32>
    %169 = arith.addf %164, %168 : vector<8x128xf32>
    %170 = math.tanh %169 : vector<8x128xf32>
    %cst_41 = arith.constant 1.000000e+00 : f32
    %171 = vector.broadcast %cst_41 : f32 to vector<8x128xf32>
    %172 = arith.subf %171, %163 : vector<8x128xf32>
    %173 = arith.mulf %172, %170 : vector<8x128xf32>
    %174 = arith.mulf %163, %142 : vector<8x128xf32>
    %175 = arith.addf %173, %174 : vector<8x128xf32>
    %c5_i32 = arith.constant 5 : i32
    %c8_i32_42 = arith.constant 8 : i32
    %176 = arith.muli %c5_i32, %c8_i32_42 : i32
    %177 = tpu.assume_multiple %176, 8 : i32
    %178 = arith.index_cast %177 : i32 to index
    %c0_43 = arith.constant 0 : index
    %179 = vector.load %arg6[%178, %c0_43] : memref<64x384xf32, #tpu.memory_space<vmem>>, vector<8x384xf32>
    %cst_44 = arith.constant dense<0.000000e+00> : vector<8x384xf32>
    %180 = tpu.matmul %175, %8, %cst_44 {dimension_numbers = #tpu.dot_dimension_numbers<[1], [0], [0], [1], [0, 0, 1, 1], [], []>} : vector<8x128xf32>, vector<128x384xf32>, vector<8x384xf32> -> vector<8x384xf32>
    %181 = vector.extract_strided_slice %179 {offsets = [0, 0], sizes = [8, 128], strides = [1, 1]} : vector<8x384xf32> to vector<8x128xf32>
    %182 = vector.extract_strided_slice %180 {offsets = [0, 0], sizes = [8, 128], strides = [1, 1]} : vector<8x384xf32> to vector<8x128xf32>
    %183 = arith.addf %181, %182 : vector<8x128xf32>
    %184 = arith.negf %183 : vector<8x128xf32>
    %185 = math.exp %184 : vector<8x128xf32>
    %cst_45 = arith.constant 1.000000e+00 : f32
    %186 = vector.broadcast %cst_45 : f32 to vector<8x128xf32>
    %187 = arith.addf %186, %185 : vector<8x128xf32>
    %188 = arith.divf %186, %187 : vector<8x128xf32>
    %189 = vector.extract_strided_slice %179 {offsets = [0, 128], sizes = [8, 128], strides = [1, 1]} : vector<8x384xf32> to vector<8x128xf32>
    %190 = vector.extract_strided_slice %180 {offsets = [0, 128], sizes = [8, 128], strides = [1, 1]} : vector<8x384xf32> to vector<8x128xf32>
    %191 = arith.addf %189, %190 : vector<8x128xf32>
    %192 = arith.negf %191 : vector<8x128xf32>
    %193 = math.exp %192 : vector<8x128xf32>
    %cst_46 = arith.constant 1.000000e+00 : f32
    %194 = vector.broadcast %cst_46 : f32 to vector<8x128xf32>
    %195 = arith.addf %194, %193 : vector<8x128xf32>
    %196 = arith.divf %194, %195 : vector<8x128xf32>
    %197 = vector.extract_strided_slice %179 {offsets = [0, 256], sizes = [8, 128], strides = [1, 1]} : vector<8x384xf32> to vector<8x128xf32>
    %198 = vector.extract_strided_slice %180 {offsets = [0, 256], sizes = [8, 128], strides = [1, 1]} : vector<8x384xf32> to vector<8x128xf32>
    %199 = vector.broadcast %9 : vector<1x128xf32> to vector<8x128xf32>
    %200 = arith.addf %198, %199 : vector<8x128xf32>
    %201 = arith.mulf %188, %200 : vector<8x128xf32>
    %202 = arith.addf %197, %201 : vector<8x128xf32>
    %203 = math.tanh %202 : vector<8x128xf32>
    %cst_47 = arith.constant 1.000000e+00 : f32
    %204 = vector.broadcast %cst_47 : f32 to vector<8x128xf32>
    %205 = arith.subf %204, %196 : vector<8x128xf32>
    %206 = arith.mulf %205, %203 : vector<8x128xf32>
    %207 = arith.mulf %196, %175 : vector<8x128xf32>
    %208 = arith.addf %206, %207 : vector<8x128xf32>
    %c6_i32 = arith.constant 6 : i32
    %c8_i32_48 = arith.constant 8 : i32
    %209 = arith.muli %c6_i32, %c8_i32_48 : i32
    %210 = tpu.assume_multiple %209, 8 : i32
    %211 = arith.index_cast %210 : i32 to index
    %c0_49 = arith.constant 0 : index
    %212 = vector.load %arg6[%211, %c0_49] : memref<64x384xf32, #tpu.memory_space<vmem>>, vector<8x384xf32>
    %cst_50 = arith.constant dense<0.000000e+00> : vector<8x384xf32>
    %213 = tpu.matmul %208, %8, %cst_50 {dimension_numbers = #tpu.dot_dimension_numbers<[1], [0], [0], [1], [0, 0, 1, 1], [], []>} : vector<8x128xf32>, vector<128x384xf32>, vector<8x384xf32> -> vector<8x384xf32>
    %214 = vector.extract_strided_slice %212 {offsets = [0, 0], sizes = [8, 128], strides = [1, 1]} : vector<8x384xf32> to vector<8x128xf32>
    %215 = vector.extract_strided_slice %213 {offsets = [0, 0], sizes = [8, 128], strides = [1, 1]} : vector<8x384xf32> to vector<8x128xf32>
    %216 = arith.addf %214, %215 : vector<8x128xf32>
    %217 = arith.negf %216 : vector<8x128xf32>
    %218 = math.exp %217 : vector<8x128xf32>
    %cst_51 = arith.constant 1.000000e+00 : f32
    %219 = vector.broadcast %cst_51 : f32 to vector<8x128xf32>
    %220 = arith.addf %219, %218 : vector<8x128xf32>
    %221 = arith.divf %219, %220 : vector<8x128xf32>
    %222 = vector.extract_strided_slice %212 {offsets = [0, 128], sizes = [8, 128], strides = [1, 1]} : vector<8x384xf32> to vector<8x128xf32>
    %223 = vector.extract_strided_slice %213 {offsets = [0, 128], sizes = [8, 128], strides = [1, 1]} : vector<8x384xf32> to vector<8x128xf32>
    %224 = arith.addf %222, %223 : vector<8x128xf32>
    %225 = arith.negf %224 : vector<8x128xf32>
    %226 = math.exp %225 : vector<8x128xf32>
    %cst_52 = arith.constant 1.000000e+00 : f32
    %227 = vector.broadcast %cst_52 : f32 to vector<8x128xf32>
    %228 = arith.addf %227, %226 : vector<8x128xf32>
    %229 = arith.divf %227, %228 : vector<8x128xf32>
    %230 = vector.extract_strided_slice %212 {offsets = [0, 256], sizes = [8, 128], strides = [1, 1]} : vector<8x384xf32> to vector<8x128xf32>
    %231 = vector.extract_strided_slice %213 {offsets = [0, 256], sizes = [8, 128], strides = [1, 1]} : vector<8x384xf32> to vector<8x128xf32>
    %232 = vector.broadcast %9 : vector<1x128xf32> to vector<8x128xf32>
    %233 = arith.addf %231, %232 : vector<8x128xf32>
    %234 = arith.mulf %221, %233 : vector<8x128xf32>
    %235 = arith.addf %230, %234 : vector<8x128xf32>
    %236 = math.tanh %235 : vector<8x128xf32>
    %cst_53 = arith.constant 1.000000e+00 : f32
    %237 = vector.broadcast %cst_53 : f32 to vector<8x128xf32>
    %238 = arith.subf %237, %229 : vector<8x128xf32>
    %239 = arith.mulf %238, %236 : vector<8x128xf32>
    %240 = arith.mulf %229, %208 : vector<8x128xf32>
    %241 = arith.addf %239, %240 : vector<8x128xf32>
    %c7_i32 = arith.constant 7 : i32
    %c8_i32_54 = arith.constant 8 : i32
    %242 = arith.muli %c7_i32, %c8_i32_54 : i32
    %243 = tpu.assume_multiple %242, 8 : i32
    %244 = arith.index_cast %243 : i32 to index
    %c0_55 = arith.constant 0 : index
    %245 = vector.load %arg6[%244, %c0_55] : memref<64x384xf32, #tpu.memory_space<vmem>>, vector<8x384xf32>
    %cst_56 = arith.constant dense<0.000000e+00> : vector<8x384xf32>
    %246 = tpu.matmul %241, %8, %cst_56 {dimension_numbers = #tpu.dot_dimension_numbers<[1], [0], [0], [1], [0, 0, 1, 1], [], []>} : vector<8x128xf32>, vector<128x384xf32>, vector<8x384xf32> -> vector<8x384xf32>
    %247 = vector.extract_strided_slice %245 {offsets = [0, 0], sizes = [8, 128], strides = [1, 1]} : vector<8x384xf32> to vector<8x128xf32>
    %248 = vector.extract_strided_slice %246 {offsets = [0, 0], sizes = [8, 128], strides = [1, 1]} : vector<8x384xf32> to vector<8x128xf32>
    %249 = arith.addf %247, %248 : vector<8x128xf32>
    %250 = arith.negf %249 : vector<8x128xf32>
    %251 = math.exp %250 : vector<8x128xf32>
    %cst_57 = arith.constant 1.000000e+00 : f32
    %252 = vector.broadcast %cst_57 : f32 to vector<8x128xf32>
    %253 = arith.addf %252, %251 : vector<8x128xf32>
    %254 = arith.divf %252, %253 : vector<8x128xf32>
    %255 = vector.extract_strided_slice %245 {offsets = [0, 128], sizes = [8, 128], strides = [1, 1]} : vector<8x384xf32> to vector<8x128xf32>
    %256 = vector.extract_strided_slice %246 {offsets = [0, 128], sizes = [8, 128], strides = [1, 1]} : vector<8x384xf32> to vector<8x128xf32>
    %257 = arith.addf %255, %256 : vector<8x128xf32>
    %258 = arith.negf %257 : vector<8x128xf32>
    %259 = math.exp %258 : vector<8x128xf32>
    %cst_58 = arith.constant 1.000000e+00 : f32
    %260 = vector.broadcast %cst_58 : f32 to vector<8x128xf32>
    %261 = arith.addf %260, %259 : vector<8x128xf32>
    %262 = arith.divf %260, %261 : vector<8x128xf32>
    %263 = vector.extract_strided_slice %245 {offsets = [0, 256], sizes = [8, 128], strides = [1, 1]} : vector<8x384xf32> to vector<8x128xf32>
    %264 = vector.extract_strided_slice %246 {offsets = [0, 256], sizes = [8, 128], strides = [1, 1]} : vector<8x384xf32> to vector<8x128xf32>
    %265 = vector.broadcast %9 : vector<1x128xf32> to vector<8x128xf32>
    %266 = arith.addf %264, %265 : vector<8x128xf32>
    %267 = arith.mulf %254, %266 : vector<8x128xf32>
    %268 = arith.addf %263, %267 : vector<8x128xf32>
    %269 = math.tanh %268 : vector<8x128xf32>
    %cst_59 = arith.constant 1.000000e+00 : f32
    %270 = vector.broadcast %cst_59 : f32 to vector<8x128xf32>
    %271 = arith.subf %270, %262 : vector<8x128xf32>
    %272 = arith.mulf %271, %269 : vector<8x128xf32>
    %273 = arith.mulf %262, %241 : vector<8x128xf32>
    %274 = arith.addf %272, %273 : vector<8x128xf32>
    %c8_i32_60 = arith.constant 8 : i32
    %c0_61 = arith.constant 0 : index
    %c0_62 = arith.constant 0 : index
    %275 = vector.load %arg5[%c0_61, %c0_62] : memref<8x128xf32, #tpu.memory_space<vmem>>, vector<8x128xf32>
    tpu.vector_store %arg5[%c0_61, %c0_62], %274 {strides = array<i32>} : memref<8x128xf32, #tpu.memory_space<vmem>>, vector<8x128xf32>,
    return
  }
}

</mosaic_0001>

<bundles_post_ra>
// kernel: tpu_custom_call.1
= control target key start
LH: loop header
LB: loop body
LE: loop exit
PB: predicated region body
PF: predicated region fallthrough
CT: control target
= control target key end

     0   :  { %10 = vsyncpa [#allocation4], 0  ;;  %s3454_s0 = inlined_call_operand.hbm [shape: f32[8,8,128], index: 0, kind: input, shape index: {}]   ;;  %s3455_s1 = inlined_call_operand.hbm [shape: f32[128,384], index: 1, kind: input, shape index: {}]   ;;  %s3456_s2 = inlined_call_operand.hbm [shape: f32[128,384], index: 2, kind: input, shape index: {}]   ;;  %s3457_s3 = inlined_call_operand.vmem [shape: f32[1,384], index: 3, kind: input, shape index: {}]   ;;  %s3458_s4 = inlined_call_operand.vmem [shape: f32[1,128], index: 4, kind: input, shape index: {}]   ;;  %s3459_s5 = inlined_call_operand.hbm [shape: f32[8,128], index: 5, kind: output, shape index: {}]  }
   0x1   :  { %11 = vsyncpa [#allocation7], 0 }
   0x2   :  { %12 = vsyncpa [#allocation5], 0  ;;  %s2534_s18 = smov [#allocation6]  }
   0x3   :  { %s30_s19 = sshll.u32 %s2534_s18, 4  ;;  %s31_s19 = int_to_ptr.vmem [resolvable:$true] %s30_s19 }
   0x4   :  { %s2456_s20 = scalar_lea.vmem %s31_s19, 6144  ;;  %p2461_p1 = scmp.lt.s32.totalorder %s31_s19, %s31_s19 }
   0x5   :  { %p2457_p0 = scmp.ne.s32.totalorder %s31_s19, %s2456_s20  ;;  %p2462_p2 = scmp.lt.s32.totalorder %s2456_s20, %s2456_s20 }
   0x7   :  { %p2463_p3 = por %p2462_p2, %p2461_p1 }
   0x9   :  { %p2464_p4 = pnand %p2463_p3, %p2457_p0 }
   0xb   :  { %2467 = shalt.err (!%p2464_p4)
}
   0xc   :  { %s2535_s21 = smov 384   ;;  %s2536_s22 = smov 24  }
   0xd   :  { %36 = dma.hbm_to_vmem [thread:$0]  %s3455_s1, 6144, %s31_s19, [#allocation7], %s2535_s21, %s2535_s21, %s2536_s22  }
   0xe   :  { %s2537_s25 = smov [#allocation3]  }
   0xf   :  { %s18_s26 = sshll.u32 %s2537_s25, 4  ;;  %s19_s26 = int_to_ptr.vmem [resolvable:$true] %s18_s26 }
  0x10   :  { %s2476_s27 = scalar_lea.vmem %s19_s26, 1024  ;;  %p2481_p6 = scmp.lt.s32.totalorder %s19_s26, %s19_s26 }
  0x11   :  { %p2477_p5 = scmp.ne.s32.totalorder %s19_s26, %s2476_s27  ;;  %p2482_p7 = scmp.lt.s32.totalorder %s2476_s27, %s2476_s27 }
  0x13   :  { %p2483_p8 = por %p2482_p7, %p2481_p6 }
  0x15   :  { %p2484_p9 = pnand %p2483_p8, %p2477_p5 }
  0x17   :  { %2487 = shalt.err (!%p2484_p9)
}
  0x18   :  { %s2538_s28 = smov 128   ;;  %s2539_s29 = smov 8  }
  0x19   :  { %24 = dma.hbm_to_vmem [thread:$0]  %s3454_s0, 1024, %s19_s26, [#allocation4], %s2538_s28, %s2538_s28, %s2539_s29  }
  0x1a   :  { %s2540_s7 = smov [#allocation8]  }
  0x1b   :  { %s42_s8 = sshll.u32 %s2540_s7, 4  ;;  %s43_s8 = int_to_ptr.vmem [resolvable:$true] %s42_s8 }
  0x1c   :  { %s2496_s1 = scalar_lea.vmem %s43_s8, 6144  ;;  %p2501_p11 = scmp.lt.s32.totalorder %s43_s8, %s43_s8 }
  0x1d   :  { %p2497_p10 = scmp.ne.s32.totalorder %s43_s8, %s2496_s1  ;;  %p2502_p12 = scmp.lt.s32.totalorder %s2496_s1, %s2496_s1 }
  0x1f   :  { %p2503_p13 = por %p2502_p12, %p2501_p11 }
  0x21   :  { %p2504_p0 = pnand %p2503_p13, %p2497_p10 }
  0x23   :  { %2507 = shalt.err (!%p2504_p0)
}
  0x24   :  { %48 = dma.hbm_to_vmem [thread:$0]  %s3456_s2, 6144, %s43_s8, [#allocation7], %s2535_s21, %s2535_s21, %s2536_s22  }
  0x25   :  { %2528 = dma.done.wait [#allocation4], 1024  }
  0x26   :  { %2529 = vsyncadd [#allocation4], 4294966272 }
  0x27   :  { %2530 = dma.done.wait [#allocation7], 12288  }
  0x28   :  { %2531 = vsyncadd [#allocation7], 4294955008  ;;  %v3460_v0 = vmov 0.0   ;;  %v116_v1 = vld [vmem:[#allocation6 + $0x170] sm:$0xff]  ;;  %v115_v2 = vld [vmem:[#allocation6 + $0x168] sm:$0xff]  ;;  %vm2542_vm0 = vmmov 0  }
  0x29   :  { %199 = vmatprep.mubr.f32.mxu0 %v3460_v0  ;;  %v113_v3 = vld [vmem:[#allocation6 + $0x158] sm:$0xff]  ;;  %135 = vmatprep.subr.mxu0 %v116_v1  ;;  %v112_v4 = vld [vmem:[#allocation6 + $0x150] sm:$0xff]  ;;  %v110_v5 = vld [vmem:[#allocation6 + $0x140] sm:$0xff] }
  0x2a   :  { %136 = vmatpush1.msra.mxu0 %v115_v2  ;;  %v109_v6 = vld [vmem:[#allocation6 + $0x138] sm:$0xff]  ;;  %v107_v7 = vld [vmem:[#allocation6 + $0x128] sm:$0xff]  ;;  %v106_v8 = vld [vmem:[#allocation6 + $0x120] sm:$0xff] }
  0x2b   :  { %137 = vmatprep.subr.mxu0 %v113_v3  ;;  %v104_v9 = vld [vmem:[#allocation6 + $0x110] sm:$0xff]  ;;  %v103_v10 = vld [vmem:[#allocation6 + $0x108] sm:$0xff]  ;;  %v101_v11 = vld [vmem:[#allocation6 + $0xf8] sm:$0xff] }
  0x2c   :  { %138 = vmatpush1.msra.mxu0 %v112_v4  ;;  %v100_v12 = vld [vmem:[#allocation6 + $0xf0] sm:$0xff]  ;;  %v98_v13 = vld [vmem:[#allocation6 + $0xe0] sm:$0xff]  ;;  %v117_v14 = vld [vmem:[#allocation6 + $0x178] sm:$0xff] }
  0x2d   :  { %139 = vmatprep.subr.mxu0 %v110_v5  ;;  %v97_v15 = vld [vmem:[#allocation6 + $0xd8] sm:$0xff]  ;;  %1985 = vmatprep.subr.mxu1 %v117_v14  ;;  %v114_v16 = vld [vmem:[#allocation6 + $0x160] sm:$0xff]  ;;  %v95_v17 = vld [vmem:[#allocation6 + $0xc8] sm:$0xff] }
  0x2e   :  { %140 = vmatpush1.msra.mxu0 %v109_v6  ;;  %1986 = vmatpush3.msra.mxu1 %v117_v14  ;;  %v111_v18 = vld [vmem:[#allocation6 + $0x148] sm:$0xff]  ;;  %v94_v19 = vld [vmem:[#allocation6 + $0xc0] sm:$0xff]  ;;  %v92_v20 = vld [vmem:[#allocation6 + $0xb0] sm:$0xff] }
  0x2f   :  { %141 = vmatprep.subr.mxu0 %v107_v7  ;;  %1987 = vmatprep.subr.mxu1 %v114_v16  ;;  %v108_v21 = vld [vmem:[#allocation6 + $0x130] sm:$0xff]  ;;  %v91_v22 = vld [vmem:[#allocation6 + $0xa8] sm:$0xff]  ;;  %v89_v23 = vld [vmem:[#allocation6 + $0x98] sm:$0xff] }
  0x30   :  { %142 = vmatpush1.msra.mxu0 %v106_v8  ;;  %1988 = vmatpush3.msra.mxu1 %v114_v16  ;;  %v105_v24 = vld [vmem:[#allocation6 + $0x118] sm:$0xff]  ;;  %v88_v25 = vld [vmem:[#allocation6 + $0x90] sm:$0xff]  ;;  %v86_v26 = vld [vmem:[#allocation6 + $0x80] sm:$0xff] }
  0x31   :  { %143 = vmatprep.subr.mxu0 %v104_v9  ;;  %1989 = vmatprep.subr.mxu1 %v111_v18  ;;  %v102_v27 = vld [vmem:[#allocation6 + $0x100] sm:$0xff]  ;;  %v85_v28 = vld [vmem:[#allocation6 + $0x78] sm:$0xff]  ;;  %v83_v29 = vld [vmem:[#allocation6 + $0x68] sm:$0xff] }
  0x32   :  { %144 = vmatpush1.msra.mxu0 %v103_v10  ;;  %1990 = vmatpush3.msra.mxu1 %v111_v18  ;;  %v99_v30 = vld [vmem:[#allocation6 + $0xe8] sm:$0xff]  ;;  %v82_v31 = vld [vmem:[#allocation6 + $0x60] sm:$0xff]  ;;  %v80_v32 = vld [vmem:[#allocation6 + $0x50] sm:$0xff] }
  0x33   :  { %145 = vmatprep.subr.mxu0 %v101_v11  ;;  %1991 = vmatprep.subr.mxu1 %v108_v21  ;;  %v96_v33 = vld [vmem:[#allocation6 + $0xd0] sm:$0xff]  ;;  %v79_v34 = vld [vmem:[#allocation6 + $0x48] sm:$0xff]  ;;  %v77_v35 = vld [vmem:[#allocation6 + $0x38] sm:$0xff] }
  0x34   :  { %146 = vmatpush1.msra.mxu0 %v100_v12  ;;  %1992 = vmatpush3.msra.mxu1 %v108_v21  ;;  %v93_v36 = vld [vmem:[#allocation6 + $0xb8] sm:$0xff]  ;;  %v76_v37 = vld [vmem:[#allocation6 + $0x30] sm:$0xff]  ;;  %v74_v38 = vld [vmem:[#allocation6 + $0x20] sm:$0xff] }
  0x35   :  { %147 = vmatprep.subr.mxu0 %v98_v13  ;;  %1993 = vmatprep.subr.mxu1 %v105_v24  ;;  %v90_v39 = vld [vmem:[#allocation6 + $0xa0] sm:$0xff]  ;;  %v73_v40 = vld [vmem:[#allocation6 + $0x18] sm:$0xff]  ;;  %v71_v41 = vld [vmem:[#allocation6 + $0x8] sm:$0xff] }
  0x36   :  { %148 = vmatpush1.msra.mxu0 %v97_v15  ;;  %1994 = vmatpush3.msra.mxu1 %v105_v24  ;;  %v87_v42 = vld [vmem:[#allocation6 + $0x88] sm:$0xff]  ;;  %v70_v43 = vld [vmem:[#allocation6] sm:$0xff]  ;;  %v2586_v45 = vld [vmem:[#allocation8 + $0x170] sm:$0xff] }
  0x37   :  { %149 = vmatprep.subr.mxu0 %v95_v17  ;;  %1995 = vmatprep.subr.mxu1 %v102_v27  ;;  %v2584_v44 = vld [vmem:[#allocation3] sm:$0xff]  ;;  %3478 = vst [vmem:[#allocation13_spill] sm:$0xff] %v2586_v45  ;;  %v2588_v46 = vld [vmem:[#allocation8 + $0x168] sm:$0xff]  ;;  %v2590_v47 = vld [vmem:[#allocation8 + $0x158] sm:$0xff] }
  0x38   :  { %150 = vmatpush1.msra.mxu0 %v94_v19  ;;  %1996 = vmatpush3.msra.mxu1 %v102_v27  ;;  %v84_v48 = vld [vmem:[#allocation6 + $0x70] sm:$0xff]  ;;  %v2598_v50 = vld [vmem:[#allocation3 + $0x8] sm:$0xff]  ;;  %v2600_v51 = vld [vmem:[#allocation8 + $0x140] sm:$0xff] }
  0x39   :  { %151 = vmatprep.subr.mxu0 %v92_v20  ;;  %1997 = vmatprep.subr.mxu1 %v99_v30  ;;  %v2594_v49 = vld [vmem:[#allocation8 + $0x150] sm:$0xff]  ;;  %v2603_v52 = vld [vmem:[#allocation8 + $0x138] sm:$0xff]  ;;  %v2606_v53 = vld [vmem:[#allocation8 + $0x128] sm:$0xff] }
  0x3a   :  { %152 = vmatpush1.msra.mxu0 %v91_v22  ;;  %1998 = vmatpush3.msra.mxu1 %v99_v30  ;;  %v81_v54 = vld [vmem:[#allocation6 + $0x58] sm:$0xff]  ;;  %v2610_v55 = vld [vmem:[#allocation8 + $0x120] sm:$0xff]  ;;  %v2614_v56 = vld [vmem:[#allocation3 + $0x10] sm:$0xff] }
  0x3b   :  { %153 = vmatprep.subr.mxu0 %v89_v23  ;;  %1999 = vmatprep.subr.mxu1 %v96_v33  ;;  %v2616_v57 = vld [vmem:[#allocation8 + $0x110] sm:$0xff]  ;;  %v2619_v58 = vld [vmem:[#allocation8 + $0x108] sm:$0xff]  ;;  %v2622_v59 = vld [vmem:[#allocation8 + $0xf8] sm:$0xff] }
  0x3c   :  { %154 = vmatpush1.msra.mxu0 %v88_v25  ;;  %2000 = vmatpush3.msra.mxu1 %v96_v33  ;;  %v78_v60 = vld [vmem:[#allocation6 + $0x40] sm:$0xff]  ;;  %v2626_v61 = vld [vmem:[#allocation8 + $0xf0] sm:$0xff]  ;;  %v2630_v62 = vld [vmem:[#allocation3 + $0x18] sm:$0xff] }
  0x3d   :  { %155 = vmatprep.subr.mxu0 %v86_v26  ;;  %2001 = vmatprep.subr.mxu1 %v93_v36  ;;  %v2632_v63 = vld [vmem:[#allocation8 + $0xe0] sm:$0xff]  ;;  %v2635_v1 = vld [vmem:[#allocation8 + $0xd8] sm:$0xff]  ;;  %v2638_v2 = vld [vmem:[#allocation8 + $0xc8] sm:$0xff] }
  0x3e   :  { %156 = vmatpush1.msra.mxu0 %v85_v28  ;;  %2002 = vmatpush3.msra.mxu1 %v93_v36  ;;  %v75_v3 = vld [vmem:[#allocation6 + $0x28] sm:$0xff]  ;;  %v2642_v4 = vld [vmem:[#allocation8 + $0xc0] sm:$0xff]  ;;  %v2648_v6 = vld [vmem:[#allocation8 + $0xb0] sm:$0xff] }
  0x3f   :  { %157 = vmatprep.subr.mxu0 %v83_v29  ;;  %2003 = vmatprep.subr.mxu1 %v90_v39  ;;  %v2646_v5 = vld [vmem:[#allocation3 + $0x20] sm:$0xff]  ;;  %v2651_v7 = vld [vmem:[#allocation8 + $0xa8] sm:$0xff]  ;;  %v2654_v8 = vld [vmem:[#allocation8 + $0x98] sm:$0xff] }
  0x40   :  { %158 = vmatpush1.msra.mxu0 %v82_v31  ;;  %2004 = vmatpush3.msra.mxu1 %v90_v39  ;;  %v72_v9 = vld [vmem:[#allocation6 + $0x10] sm:$0xff]  ;;  %v67_v11 = vld [vmem:[#allocation3 + $0x28] sm:$0xff]  ;;  %v2662_v12 = vld [vmem:[#allocation8 + $0x80] sm:$0xff] }
  0x41   :  { %159 = vmatprep.subr.mxu0 %v80_v32  ;;  %2005 = vmatprep.subr.mxu1 %v87_v42  ;;  %v2658_v10 = vld [vmem:[#allocation8 + $0x90] sm:$0xff]  ;;  %v2665_v13 = vld [vmem:[#allocation8 + $0x78] sm:$0xff]  ;;  %v2668_v14 = vld [vmem:[#allocation8 + $0x68] sm:$0xff] }
  0x42   :  { %160 = vmatpush1.msra.mxu0 %v79_v34  ;;  %2006 = vmatpush3.msra.mxu1 %v87_v42  ;;  %v2671_v15 = vld [vmem:[#allocation8 + $0x60] sm:$0xff]  ;;  %v68_v16 = vld [vmem:[#allocation3 + $0x30] sm:$0xff]  ;;  %v2678_v18 = vld [vmem:[#allocation8 + $0x48] sm:$0xff]  ;;  %v120_v42 = vlaneseq }
  0x43   :  { %161 = vmatprep.subr.mxu0 %v77_v35  ;;  %2007 = vmatprep.subr.mxu1 %v84_v48  ;;  %v2675_v17 = vld [vmem:[#allocation8 + $0x50] sm:$0xff]  ;;  %v2682_v19 = vld [vmem:[#allocation8 + $0x38] sm:$0xff]  ;;  %v2692_v23 = vld [vmem:[#allocation8 + $0x20] sm:$0xff] }
  0x44   :  { %162 = vmatpush1.msra.mxu0 %v76_v37  ;;  %2008 = vmatpush3.msra.mxu1 %v84_v48  ;;  %v2686_v20 = vld [vmem:[#allocation8 + $0x30] sm:$0xff]  ;;  %v2688_v21 = vld [vmem:[#allocation8 + $0x178] sm:$0xff]  ;;  %v2699_v25 = vld [vmem:[#allocation8 + $0x8] sm:$0xff] }
  0x45   :  { %163 = vmatprep.subr.mxu0 %v74_v38  ;;  %2009 = vmatprep.subr.mxu1 %v81_v54  ;;  %v69_v22 = vld [vmem:[#allocation3 + $0x38] sm:$0xff]  ;;  %3480 = vst [vmem:[#allocation15_spill] sm:$0xff] %v2699_v25  ;;  %v2703_v26 = vld [vmem:[#allocation8] sm:$0xff]  ;;  %v2711_v28 = vld [vmem:[#allocation8 + $0x148] sm:$0xff] }
  0x46   :  { %164 = vmatpush1.msra.mxu0 %v73_v40  ;;  %2010 = vmatpush3.msra.mxu1 %v81_v54  ;;  %v2695_v24 = vld [vmem:[#allocation8 + $0x18] sm:$0xff]  ;;  %3481 = vst [vmem:[#allocation16_spill] sm:$0xff] %v2703_v26  ;;  %v2705_v27 = vld [vmem:[#allocation8 + $0x160] sm:$0xff]  ;;  %v2717_v29 = vld [vmem:[#allocation8 + $0x130] sm:$0xff] }
  0x47   :  { %165 = vmatprep.subr.mxu0 %v71_v41  ;;  %2011 = vmatprep.subr.mxu1 %v78_v60  ;;  %3479 = vst [vmem:[#allocation14_spill] sm:$0xff] %v2695_v24  ;;  %v2722_v30 = vld [vmem:[#allocation8 + $0x118] sm:$0xff]  ;;  %v2728_v31 = vld [vmem:[#allocation8 + $0x100] sm:$0xff]  ;;  %v2734_v32 = vld [vmem:[#allocation8 + $0xe8] sm:$0xff] }
  0x48   :  { %166 = vmatpush1.msra.mxu0 %v70_v43  ;;  %2012 = vmatpush3.msra.mxu1 %v78_v60  ;;  %v2738_v33 = vld [vmem:[#allocation8 + $0xd0] sm:$0xff]  ;;  %v2744_v34 = vld [vmem:[#allocation8 + $0xb8] sm:$0xff]  ;;  %v2750_v35 = vld [vmem:[#allocation8 + $0xa0] sm:$0xff]  ;;  %v121_v43 = vshrl.u32 %v120_v42, 7 }
  0x49   :  { %200 = vmatmul.mubr.f32.vlgmr.msra.gmra.mxu0 %v2584_v44  ;;  %432 = vmatprep.subr.mxu0 %v2586_v45  ;;  %v2756_v36 = vld [vmem:[#allocation8 + $0x88] sm:$0xff]  ;;  %v2762_v37 = vld [vmem:[#allocation8 + $0x70] sm:$0xff]  ;;  %v2768_v38 = vld [vmem:[#allocation8 + $0x58] sm:$0xff] }
  0x4a   :  { %433 = vmatpush1.msra.mxu0 %v2588_v46  ;;  %205 = vmatprep.mubr.f32.mxu0 %v3460_v0  ;;  %v2774_v39 = vld [vmem:[#allocation8 + $0x40] sm:$0xff]  ;;  %v2780_v40 = vld [vmem:[#allocation8 + $0x28] sm:$0xff]  ;;  %v2786_v41 = vld [vmem:[#allocation8 + $0x10] sm:$0xff]  ;;  %v126_v54 = vsub.s32 1, %v121_v43 }
  0x4b   :  { %434 = vmatprep.subr.mxu0 %v2590_v47  ;;  %2013 = vmatprep.subr.mxu1 %v75_v3  ;;  %3482 = vst [vmem:[#allocation17_spill] sm:$0xff] %v2780_v40  ;;  %3483 = vst [vmem:[#allocation18_spill] sm:$0xff] %v2786_v41  ;;  %v118_v48 = vld [vmem:[%s3457_s3] sm:$0x7] }
  0x4c   :  { %435 = vmatpush1.msra.mxu0 %v2594_v49  ;;  %2014 = vmatpush3.msra.mxu1 %v75_v3  ;;  %v127_v3 = vrot.slane %v118_v48, %v126_v54 }
  0x4d   :  { %206 = vmatmul.mubr.f32.gmra.mxu0 %v2598_v50  ;;  %436 = vmatprep.subr.mxu0 %v2600_v51 }
  0x4e   :  { %437 = vmatpush1.msra.mxu0 %v2603_v52  ;;  %211 = vmatprep.mubr.f32.mxu0 %v3460_v0 }
  0x4f   :  { %438 = vmatprep.subr.mxu0 %v2606_v53  ;;  %2015 = vmatprep.subr.mxu1 %v72_v9 }
  0x50   :  { %439 = vmatpush1.msra.mxu0 %v2610_v55  ;;  %2016 = vmatpush3.msra.mxu1 %v72_v9 }
  0x51   :  { %212 = vmatmul.mubr.f32.gmra.mxu0 %v2614_v56  ;;  %440 = vmatprep.subr.mxu0 %v2616_v57 }
  0x52   :  { %441 = vmatpush1.msra.mxu0 %v2619_v58  ;;  %217 = vmatprep.mubr.f32.mxu0 %v3460_v0 }
  0x53   :  { %442 = vmatprep.subr.mxu0 %v2622_v59  ;;  %2017 = vmatprep.mubr.f32.mxu1 %v2584_v44  ;;  %v122_v44 = vsub.s32 0, %v121_v43 }
  0x54   :  { %443 = vmatpush1.msra.mxu0 %v2626_v61  ;;  %2029 = vmatprep.subr.mxu1 %v3460_v0 }
  0x55   :  { %218 = vmatmul.mubr.f32.gmra.mxu0 %v2630_v62  ;;  %444 = vmatprep.subr.mxu0 %v2632_v63  ;;  %v123_v60 = vrot.slane %v118_v48, %v122_v44 }
  0x56   :  { %445 = vmatpush1.msra.mxu0 %v2635_v1  ;;  %223 = vmatprep.mubr.f32.mxu0 %v3460_v0 }
  0x57   :  { %446 = vmatprep.subr.mxu0 %v2638_v2  ;;  %2018 = vmatmul.mubr.f32.vlgmr.msra.gmra.mxu1 %v2598_v50 }
  0x58   :  { %447 = vmatpush1.msra.mxu0 %v2642_v4  ;;  %2030 = vmatpush3.msra.mxu1 %v2688_v21 }
  0x59   :  { %224 = vmatmul.mubr.f32.gmra.mxu0 %v2646_v5  ;;  %448 = vmatprep.subr.mxu0 %v2648_v6 }
  0x5a   :  { %449 = vmatpush1.msra.mxu0 %v2651_v7  ;;  %229 = vmatprep.mubr.f32.mxu0 %v3460_v0 }
  0x5b   :  { %450 = vmatprep.subr.mxu0 %v2654_v8  ;;  %2031 = vmatprep.subr.mxu1 %v3460_v0 }
  0x5c   :  { %451 = vmatpush1.msra.mxu0 %v2658_v10  ;;  %2032 = vmatpush3.msra.mxu1 %v2705_v27 }
  0x5d   :  { %230 = vmatmul.mubr.f32.gmra.mxu0 %v67_v11  ;;  %452 = vmatprep.subr.mxu0 %v2662_v12 }
  0x5e   :  { %453 = vmatpush1.msra.mxu0 %v2665_v13  ;;  %235 = vmatprep.mubr.f32.mxu0 %v3460_v0 }
  0x5f   :  { %454 = vmatprep.subr.mxu0 %v2668_v14  ;;  %2033 = vmatprep.subr.mxu1 %v3460_v0 }
  0x60   :  { %455 = vmatpush1.msra.mxu0 %v2671_v15  ;;  %2034 = vmatpush3.msra.mxu1 %v2711_v28 }
  0x61   :  { %236 = vmatmul.mubr.f32.gmra.mxu0 %v68_v16  ;;  %456 = vmatprep.subr.mxu0 %v2675_v17 }
  0x62   :  { %457 = vmatpush1.msra.mxu0 %v2678_v18  ;;  %241 = vmatprep.mubr.f32.mxu0 %v3460_v0 }
  0x63   :  { %458 = vmatprep.subr.mxu0 %v2682_v19  ;;  %2020 = vmatprep.mubr.f32.mxu1 %v2614_v56 }
  0x64   :  { %459 = vmatpush1.msra.mxu0 %v2686_v20  ;;  %2035 = vmatprep.subr.mxu1 %v3460_v0 }
  0x65   :  { %242 = vmatmul.mubr.f32.gmra.mxu0 %v69_v22  ;;  %460 = vmatprep.subr.mxu0 %v2692_v23 }
  0x66   :  { %461 = vmatpush1.msra.mxu0 %v2695_v24  ;;  %496 = vmatprep.mubr.f32.mxu0 %v3460_v0 }
  0x67   :  { %462 = vmatprep.subr.mxu0 %v2699_v25  ;;  %2021 = vmatmul.mubr.f32.gmra.mxu1 %v2630_v62 }
  0x68   :  { %463 = vmatpush1.msra.mxu0 %v2703_v26  ;;  %2036 = vmatpush3.msra.mxu1 %v2717_v29 }
  0x69   :  { %497 = vmatmul.mubr.f32.vlgmr.msra.gmra.mxu0 %v3460_v0  ;;  %2023 = vmatprep.mubr.f32.mxu1 %v2646_v5 }
  0x6a   :  { %2037 = vmatprep.subr.mxu1 %v3460_v0  ;;  %607 = vmatprep.subr.mxu0 %v2586_v45 }
  0x6b   :  { %2038 = vmatpush3.msra.mxu1 %v2722_v30  ;;  %608 = vmatpush1.msra.mxu0 %v2588_v46 }
  0x6c   :  { %2039 = vmatprep.subr.mxu1 %v3460_v0  ;;  %2024 = vmatmul.mubr.f32.gmra.mxu1 %v67_v11 }
  0x6d   :  { %2040 = vmatpush3.msra.mxu1 %v2728_v31  ;;  %2026 = vmatprep.mubr.f32.mxu1 %v68_v16 }
  0x6e   :  { %2041 = vmatprep.subr.mxu1 %v3460_v0  ;;  %609 = vmatprep.subr.mxu0 %v2590_v47 }
  0x6f   :  { %2042 = vmatpush3.msra.mxu1 %v2734_v32  ;;  %610 = vmatpush1.msra.mxu0 %v2594_v49 }
  0x70   :  { %2043 = vmatprep.subr.mxu1 %v3460_v0  ;;  %2027 = vmatmul.mubr.f32.gmra.mxu1 %v69_v22 }
  0x71   :  { %2044 = vmatpush3.msra.mxu1 %v2738_v33  ;;  %2061 = vmatprep.mubr.msk.f32.mxu1 %vm2542_vm0, %v3460_v0 }
  0x72   :  { %2045 = vmatprep.subr.mxu1 %v3460_v0  ;;  %611 = vmatprep.subr.mxu0 %v2600_v51 }
  0x73   :  { %2046 = vmatpush3.msra.mxu1 %v2744_v34  ;;  %612 = vmatpush1.msra.mxu0 %v2603_v52 }
  0x74   :  { %2047 = vmatprep.subr.mxu1 %v3460_v0  ;;  %613 = vmatprep.subr.mxu0 %v2606_v53 }
  0x75   :  { %2048 = vmatpush3.msra.mxu1 %v2750_v35  ;;  %614 = vmatpush1.msra.mxu0 %v2610_v55 }
  0x76   :  { %2049 = vmatprep.subr.mxu1 %v3460_v0  ;;  %615 = vmatprep.subr.mxu0 %v2616_v57 }
  0x77   :  { %2050 = vmatpush3.msra.mxu1 %v2756_v36  ;;  %616 = vmatpush1.msra.mxu0 %v2619_v58 }
  0x78   :  { %2051 = vmatprep.subr.mxu1 %v3460_v0  ;;  %617 = vmatprep.subr.mxu0 %v2622_v59 }
  0x79   :  { %2052 = vmatpush3.msra.mxu1 %v2762_v37  ;;  %618 = vmatpush1.msra.mxu0 %v2626_v61 }
  0x7a   :  { %2053 = vmatprep.subr.mxu1 %v3460_v0  ;;  %619 = vmatprep.subr.mxu0 %v2632_v63 }
  0x7b   :  { %2054 = vmatpush3.msra.mxu1 %v2768_v38  ;;  %620 = vmatpush1.msra.mxu0 %v2635_v1 }
  0x7c   :  { %2055 = vmatprep.subr.mxu1 %v3460_v0  ;;  %621 = vmatprep.subr.mxu0 %v2638_v2 }
  0x7d   :  { %2056 = vmatpush3.msra.mxu1 %v2774_v39  ;;  %622 = vmatpush1.msra.mxu0 %v2642_v4 }
  0x7e   :  { %2057 = vmatprep.subr.mxu1 %v3460_v0  ;;  %623 = vmatprep.subr.mxu0 %v2648_v6 }
  0x7f   :  { %2058 = vmatpush3.msra.mxu1 %v2780_v40  ;;  %624 = vmatpush1.msra.mxu0 %v2651_v7 }
  0x80   :  { %2059 = vmatprep.subr.mxu1 %v3460_v0  ;;  %625 = vmatprep.subr.mxu0 %v2654_v8 }
  0x81   :  { %2060 = vmatpush3.msra.mxu1 %v2786_v41  ;;  %626 = vmatpush1.msra.mxu0 %v2658_v10 }
  0x82   :  { %2062 = vmatmul.mubr.f32.vlgmr.msra.gmra.mxu1 %v3460_v0  ;;  %2064 = vmatprep.subr.mxu1 %v3460_v0 }
  0x83   :  { %2065 = vmatpush3.msra.mxu1 %v2688_v21  ;;  %627 = vmatprep.subr.mxu0 %v2662_v12 }
  0x84   :  { %2066 = vmatprep.subr.mxu1 %v3460_v0  ;;  %628 = vmatpush1.msra.mxu0 %v2665_v13 }
  0x85   :  { %2067 = vmatpush3.msra.mxu1 %v2705_v27  ;;  %629 = vmatprep.subr.mxu0 %v2668_v14 }
  0x86   :  { %2068 = vmatprep.subr.mxu1 %v3460_v0  ;;  %630 = vmatpush1.msra.mxu0 %v2671_v15 }
  0x87   :  { %2069 = vmatpush3.msra.mxu1 %v2711_v28  ;;  %631 = vmatprep.subr.mxu0 %v2675_v17 }
  0x88   :  { %2070 = vmatprep.subr.mxu1 %v3460_v0  ;;  %632 = vmatpush1.msra.mxu0 %v2678_v18 }
  0x89   :  { %2071 = vmatpush3.msra.mxu1 %v2717_v29  ;;  %633 = vmatprep.subr.mxu0 %v2682_v19 }
  0x8a   :  { %2072 = vmatprep.subr.mxu1 %v3460_v0  ;;  %634 = vmatpush1.msra.mxu0 %v2686_v20 }
  0x8b   :  { %2073 = vmatpush3.msra.mxu1 %v2722_v30  ;;  %635 = vmatprep.subr.mxu0 %v2692_v23 }
  0x8c   :  { %2074 = vmatprep.subr.mxu1 %v3460_v0  ;;  %636 = vmatpush1.msra.mxu0 %v2695_v24 }
  0x8d   :  { %2075 = vmatpush3.msra.mxu1 %v2728_v31  ;;  %637 = vmatprep.subr.mxu0 %v2699_v25 }
  0x8e   :  { %2076 = vmatprep.subr.mxu1 %v3460_v0  ;;  %638 = vmatpush1.msra.mxu0 %v2703_v26 }
  0x8f   :  { %2077 = vmatpush3.msra.mxu1 %v2734_v32  ;;  %671 = vmatprep.mubr.f32.mxu0 %v3460_v0 }
  0x90   :  { %2078 = vmatprep.subr.mxu1 %v3460_v0  ;;  %2096 = vmatprep.mubr.msk.f32.mxu1 %vm2542_vm0, %v3460_v0 }
  0x91   :  { %2079 = vmatpush3.msra.mxu1 %v2738_v33  ;;  %776 = vmatprep.subr.mxu0 %v2586_v45 }
  0x92   :  { %2080 = vmatprep.subr.mxu1 %v3460_v0 }
  0x93   :  { %2081 = vmatpush3.msra.mxu1 %v2744_v34 }
  0x94   :  { %2082 = vmatprep.subr.mxu1 %v3460_v0 }
  0x95   :  { %2083 = vmatpush3.msra.mxu1 %v2750_v35 }
  0x96   :  { %2084 = vmatprep.subr.mxu1 %v3460_v0 }
  0x97   :  { %2085 = vmatpush3.msra.mxu1 %v2756_v36 }
  0x98   :  { %2086 = vmatprep.subr.mxu1 %v3460_v0 }
  0x99   :  { %2087 = vmatpush3.msra.mxu1 %v2762_v37 }
  0x9a   :  { %2088 = vmatprep.subr.mxu1 %v3460_v0 }
  0x9b   :  { %2089 = vmatpush3.msra.mxu1 %v2768_v38 }
  0x9c   :  { %2090 = vmatprep.subr.mxu1 %v3460_v0 }
  0x9d   :  { %2091 = vmatpush3.msra.mxu1 %v2774_v39 }
  0x9e   :  { %2092 = vmatprep.subr.mxu1 %v3460_v0 }
  0x9f   :  { %2093 = vmatpush3.msra.mxu1 %v2780_v40 }
  0xa0   :  { %2094 = vmatprep.subr.mxu1 %v3460_v0 }
  0xa1   :  { %2095 = vmatpush3.msra.mxu1 %v2786_v41 }
  0xa2   :  { %2099 = vmatprep.subr.mxu1 %v3460_v0 }
 0x109   :  { %v201_v50 = vpop.f32.mrf.mxu0 }
 0x10b   :  { %v203_v56 = vpop.f32.mrf.mxu0 }
 0x10d   :  { %v207_v62 = vpop.f32.mrf.mxu0 }
 0x10e   :  { %v2848_v5 = vadd.f32 %v207_v62, %v123_v60 }
 0x10f   :  { %v209_v9 = vpop.f32.mrf.mxu0 }
 0x110   :  { %3484 = vst [vmem:[#allocation19_spill] sm:$0xff] %v2848_v5  ;;  %v2850_v11 = vadd.f32 %v209_v9, %v127_v3  ;;  %v130_v9 = vsub.s32 2, %v121_v43 }
 0x111   :  { %v213_v16 = vpop.f32.mrf.mxu0 }
 0x112   :  { %3485 = vst [vmem:[#allocation20_spill] sm:$0xff] %v2850_v11  ;;  %v2852_v22 = vadd.f32 %v213_v16, %v123_v60 }
 0x113   :  { %v215_v42 = vpop.f32.mrf.mxu0 }
 0x114   :  { %3486 = vst [vmem:[#allocation21_spill] sm:$0xff] %v2852_v22  ;;  %v2854_v0 = vadd.f32 %v215_v42, %v127_v3  ;;  %v131_v42 = vrot.slane %v118_v48, %v130_v9 }
 0x115   :  { %v219_v45 = vpop.f32.mrf.mxu0 }
 0x116   :  { %3487 = vst [vmem:[#allocation22_spill] sm:$0xff] %v2854_v0  ;;  %v2856_v41 = vadd.f32 %v219_v45, %v123_v60 }
 0x117   :  { %v221_v26 = vpop.f32.mrf.mxu0 }
 0x118   :  { %3488 = vst [vmem:[#allocation23_spill] sm:$0xff] %v2856_v41  ;;  %v2858_v25 = vadd.f32 %v221_v26, %v127_v3  ;;  %v2019_v26 = vpop.f32.mrf.mxu1 }
 0x119   :  { %v225_v44 = vpop.f32.mrf.mxu0 }
 0x11a   :  { %3489 = vst [vmem:[#allocation24_spill] sm:$0xff] %v2858_v25  ;;  %v2860_v40 = vadd.f32 %v225_v44, %v123_v60  ;;  %v2872_v44 = vadd.f32 %v2019_v26, %v131_v42 }
 0x11b   :  { %v227_v54 = vpop.f32.mrf.mxu0 }
 0x11c   :  { %3490 = vst [vmem:[#allocation25_spill] sm:$0xff] %v2860_v40  ;;  %v2862_v62 = vadd.f32 %v227_v54, %v127_v3 }
 0x11d   :  { %v231_v11 = vpop.f32.mrf.mxu0 }
 0x11e   :  { %3491 = vst [vmem:[#allocation26_spill] sm:$0xff] %v2862_v62  ;;  %v2864_v5 = vadd.f32 %v231_v11, %v123_v60  ;;  %v202_v62 = vadd.f32 %v201_v50, %v123_v60 }
 0x11f   :  { %v233_v16 = vpop.f32.mrf.mxu0 }
 0x120   :  { %3492 = vst [vmem:[#allocation27_spill] sm:$0xff] %v2864_v5  ;;  %v2866_v22 = vadd.f32 %v233_v16, %v127_v3  ;;  %v314_v16 = vpop.f32.mrf.mxu1 }
 0x121   :  { %v237_v0 = vpop.f32.mrf.mxu0 }
 0x122   :  { %3493 = vst [vmem:[#allocation28_spill] sm:$0xff] %v2866_v22  ;;  %v2868_v45 = vadd.f32 %v237_v0, %v123_v60 }
 0x123   :  { %v239_v41 = vpop.f32.mrf.mxu0 }
 0x124   :  { %3494 = vst [vmem:[#allocation29_spill] sm:$0xff] %v2868_v45  ;;  %v2870_v25 = vadd.f32 %v239_v41, %v127_v3  ;;  %v204_v41 = vadd.f32 %v203_v56, %v127_v3 }
 0x125   :  { %v243_v40 = vpop.f32.mrf.mxu0 }
 0x126   :  { %3495 = vst [vmem:[#allocation30_spill] sm:$0xff] %v2870_v25  ;;  %v2874_v54 = vadd.f32 %v243_v40, %v123_v60 }
 0x127   :  { %v245_v43 = vpop.f32.mrf.mxu0  ;;  %v2022_v48 = vpop.f32.mrf.mxu1 }
 0x128   :  { %3496 = vst [vmem:[#allocation31_spill] sm:$0xff] %v2874_v54  ;;  %v2876_v11 = vadd.f32 %v245_v43, %v127_v3  ;;  %v2878_v0 = vadd.f32 %v2022_v48, %v131_v42 }
 0x129   :  { %v498_v5 = vpop.f32.mrf.mxu0  ;;  %v324_v24 = vpop.f32.mrf.mxu1 }
 0x12a   :  { %3497 = vst [vmem:[#allocation32_spill] sm:$0xff] %v2876_v11  ;;  %v573_v22 = vadd.f32 %v498_v5, %v202_v62  ;;  %3498 = vst [vmem:[#allocation33_spill] sm:$0xff] %v2878_v0  ;;  %v2880_v26 = vadd.f32 %v324_v24, %v131_v42 }
 0x12b   :  { %v500_v45 = vpop.f32.mrf.mxu0 }
 0x12c   :  { %v1808_v9 = vmul.f32 -1.442695, %v573_v22  ;;  %3499 = vst [vmem:[#allocation34_spill] sm:$0xff] %v2880_v26  ;;  %v2025_v25 = vpop.f32.mrf.mxu1  ;;  %v580_v40 = vadd.f32 %v500_v45, %v204_v41 }
 0x12d   :  { %v2882_v54 = vadd.f32 %v2025_v25, %v131_v42  ;;  %v2893_v25 = vld [vmem:[%s3458_s4] ss:$0 sm:$0xff] }
 0x12e   :  { %2319 = vpow2.f32 %v1808_v9  ;;  %v334_v50 = vpop.f32.mrf.mxu1  ;;  %v1809_v11 = vmul.f32 -1.442695, %v580_v40 }
 0x12f   :  { %3500 = vst [vmem:[#allocation35_spill] sm:$0xff] %v2882_v54  ;;  %v2884_v60 = vadd.f32 %v334_v50, %v131_v42  ;;  %v315_v50 = vadd.f32 %v314_v16, %v131_v42  ;;  %v3505_v16 = vld [vmem:[#allocation14_spill] sm:$0xff] }
 0x130   :  { %v2028_v43 = vpop.f32.mrf.mxu1  ;;  %2321 = vpow2.f32 %v1809_v11 }
 0x131   :  { %3501 = vst [vmem:[#allocation36_spill] sm:$0xff] %v2884_v60  ;;  %v2886_v5 = vadd.f32 %v2028_v43, %v131_v42 }
 0x132   :  { %v344_v22 = vpop.f32.mrf.mxu1 }
 0x133   :  { %3502 = vst [vmem:[#allocation37_spill] sm:$0xff] %v2886_v5  ;;  %v2888_v62 = vadd.f32 %v344_v22, %v131_v42  ;;  %v3504_v42 = vmov 0.0  }
 0x135   :  { %3503 = vst [vmem:[#allocation38_spill] sm:$0xff] %v2888_v62 }
 0x13b   :  { %v2320_v48 = vpop.eup %2319 }
 0x13c   :  { %v577_v56 = vadd.f32 1.0, %v2320_v48 }
 0x13d   :  { %v2322_v24 = vpop.eup %2321 }
 0x13e   :  { %2323 = vrcp.f32 %v577_v56  ;;  %v584_v9 = vadd.f32 1.0, %v2322_v24  ;;  %v3508_v24 = vld [vmem:[#allocation16_spill] sm:$0xff] }
 0x140   :  { %2325 = vrcp.f32 %v584_v9 }
 0x142   :  { %v569_v3 = vpop.f32.mrf.mxu1 }
 0x143   :  { %v593_v41 = vadd.f32 %v2893_v25, %v569_v3  ;;  %v3509_v3 = vld [vmem:[#allocation18_spill] sm:$0xff] }
 0x144   :  { %v2063_v45 = vpop.f32.mrf.mxu1 }
 0x145   :  { %v3510_v45 = vld [vmem:[#allocation13_spill] sm:$0xff] }
 0x14b   :  { %v2324_v40 = vpop.eup %2323 }
 0x14c   :  { %v594_v43 = vmul.f32 %v2324_v40, %v593_v41  ;;  %v3511_v40 = vld [vmem:[#allocation19_spill] sm:$0xff] }
 0x14d   :  { %v2326_v11 = vpop.eup %2325 }
 0x14e   :  { %v595_v22 = vadd.f32 %v594_v43, %v315_v50  ;;  %v597_v48 = vsub.f32 1.0, %v2326_v11  ;;  %v599_v62 = vmul.f32 0.0, %v2326_v11 }
 0x150   :  { %2327 = vtanh.f32 %v595_v22 }
 0x15d   :  { %v2328_v56 = vpop.eup %2327 }
 0x15e   :  { %v598_v5 = vmul.f32 %v2328_v56, %v597_v48  ;;  %v3512_v48 = vld [vmem:[#allocation20_spill] sm:$0xff] }
 0x160   :  { %v2896_v54 = vadd.f32 %v599_v62, %v598_v5  ;;  %v3506_v5 = vld [vmem:[#allocation17_spill] sm:$0xff]  ;;  %v3507_v62 = vld [vmem:[#allocation15_spill] sm:$0xff] }
 0x162   :  { %672 = vmatmul.mubr.f32.vlgmr.msra.gmra.mxu0 %v2896_v54  ;;  %2097 = vmatmul.mubr.f32.vlgmr.msra.gmra.mxu1 %v2896_v54 }
 0x163   :  { %777 = vmatpush1.msra.mxu0 %v2588_v46  ;;  %2100 = vmatpush3.msra.mxu1 %v2688_v21 }
 0x164   :  { %778 = vmatprep.subr.mxu0 %v2590_v47  ;;  %2101 = vmatprep.subr.mxu1 %v3504_v42 }
 0x165   :  { %779 = vmatpush1.msra.mxu0 %v2594_v49  ;;  %2102 = vmatpush3.msra.mxu1 %v2705_v27 }
 0x166   :  { %780 = vmatprep.subr.mxu0 %v2600_v51  ;;  %2103 = vmatprep.subr.mxu1 %v3504_v42 }
 0x167   :  { %781 = vmatpush1.msra.mxu0 %v2603_v52  ;;  %2104 = vmatpush3.msra.mxu1 %v2711_v28 }
 0x168   :  { %782 = vmatprep.subr.mxu0 %v2606_v53  ;;  %2105 = vmatprep.subr.mxu1 %v3504_v42 }
 0x169   :  { %783 = vmatpush1.msra.mxu0 %v2610_v55  ;;  %2106 = vmatpush3.msra.mxu1 %v2717_v29 }
 0x16a   :  { %784 = vmatprep.subr.mxu0 %v2616_v57  ;;  %2107 = vmatprep.subr.mxu1 %v3504_v42 }
 0x16b   :  { %785 = vmatpush1.msra.mxu0 %v2619_v58  ;;  %2108 = vmatpush3.msra.mxu1 %v2722_v30 }
 0x16c   :  { %786 = vmatprep.subr.mxu0 %v2622_v59  ;;  %2109 = vmatprep.subr.mxu1 %v3504_v42 }
 0x16d   :  { %787 = vmatpush1.msra.mxu0 %v2626_v61  ;;  %2110 = vmatpush3.msra.mxu1 %v2728_v31 }
 0x16e   :  { %788 = vmatprep.subr.mxu0 %v2632_v63  ;;  %2111 = vmatprep.subr.mxu1 %v3504_v42 }
 0x16f   :  { %789 = vmatpush1.msra.mxu0 %v2635_v1  ;;  %2112 = vmatpush3.msra.mxu1 %v2734_v32 }
 0x170   :  { %790 = vmatprep.subr.mxu0 %v2638_v2  ;;  %2113 = vmatprep.subr.mxu1 %v3504_v42 }
 0x171   :  { %791 = vmatpush1.msra.mxu0 %v2642_v4  ;;  %2114 = vmatpush3.msra.mxu1 %v2738_v33 }
 0x172   :  { %792 = vmatprep.subr.mxu0 %v2648_v6  ;;  %2115 = vmatprep.subr.mxu1 %v3504_v42 }
 0x173   :  { %793 = vmatpush1.msra.mxu0 %v2651_v7  ;;  %2116 = vmatpush3.msra.mxu1 %v2744_v34 }
 0x174   :  { %794 = vmatprep.subr.mxu0 %v2654_v8  ;;  %2117 = vmatprep.subr.mxu1 %v3504_v42 }
 0x175   :  { %795 = vmatpush1.msra.mxu0 %v2658_v10  ;;  %2118 = vmatpush3.msra.mxu1 %v2750_v35 }
 0x176   :  { %796 = vmatprep.subr.mxu0 %v2662_v12  ;;  %2119 = vmatprep.subr.mxu1 %v3504_v42 }
 0x177   :  { %797 = vmatpush1.msra.mxu0 %v2665_v13  ;;  %2120 = vmatpush3.msra.mxu1 %v2756_v36 }
 0x178   :  { %798 = vmatprep.subr.mxu0 %v2668_v14  ;;  %2121 = vmatprep.subr.mxu1 %v3504_v42 }
 0x179   :  { %799 = vmatpush1.msra.mxu0 %v2671_v15  ;;  %2122 = vmatpush3.msra.mxu1 %v2762_v37 }
 0x17a   :  { %800 = vmatprep.subr.mxu0 %v2675_v17  ;;  %2123 = vmatprep.subr.mxu1 %v3504_v42 }
 0x17b   :  { %801 = vmatpush1.msra.mxu0 %v2678_v18  ;;  %2124 = vmatpush3.msra.mxu1 %v2768_v38 }
 0x17c   :  { %802 = vmatprep.subr.mxu0 %v2682_v19  ;;  %2125 = vmatprep.subr.mxu1 %v3504_v42 }
 0x17d   :  { %803 = vmatpush1.msra.mxu0 %v2686_v20  ;;  %2126 = vmatpush3.msra.mxu1 %v2774_v39 }
 0x17e   :  { %804 = vmatprep.subr.mxu0 %v2692_v23  ;;  %2127 = vmatprep.subr.mxu1 %v3504_v42 }
 0x17f   :  { %805 = vmatpush1.msra.mxu0 %v3505_v16  ;;  %2128 = vmatpush3.msra.mxu1 %v3506_v5 }
 0x180   :  { %806 = vmatprep.subr.mxu0 %v3507_v62  ;;  %2129 = vmatprep.subr.mxu1 %v3504_v42 }
 0x181   :  { %807 = vmatpush1.msra.mxu0 %v3508_v24  ;;  %840 = vmatprep.mubr.f32.mxu0 %v3504_v42 }
 0x182   :  { %2130 = vmatpush3.msra.mxu1 %v3509_v3  ;;  %2131 = vmatprep.mubr.msk.f32.mxu1 %vm2542_vm0, %v3504_v42 }
 0x183   :  { %945 = vmatprep.subr.mxu0 %v3510_v45  ;;  %2134 = vmatprep.subr.mxu1 %v3504_v42 }
 0x222   :  { %v673_v9 = vpop.f32.mrf.mxu0  ;;  %v744_v41 = vpop.f32.mrf.mxu1 }
 0x223   :  { %v748_v50 = vadd.f32 %v673_v9, %v3511_v40  ;;  %v762_v45 = vadd.f32 %v2893_v25, %v744_v41 }
 0x224   :  { %v2098_v43 = vpop.f32.mrf.mxu1  ;;  %v675_v11 = vpop.f32.mrf.mxu0 }
 0x225   :  { %v1811_v22 = vmul.f32 -1.442695, %v748_v50  ;;  %v755_v56 = vadd.f32 %v675_v11, %v3512_v48 }
 0x227   :  { %2329 = vpow2.f32 %v1811_v22  ;;  %v1812_v60 = vmul.f32 -1.442695, %v755_v56 }
 0x229   :  { %2331 = vpow2.f32 %v1812_v60 }
 0x234   :  { %v2330_v0 = vpop.eup %2329 }
 0x235   :  { %v752_v26 = vadd.f32 1.0, %v2330_v0  ;;  %v3515_v0 = vld [vmem:[#allocation16_spill] sm:$0xff] }
 0x236   :  { %v2332_v3 = vpop.eup %2331 }
 0x237   :  { %2333 = vrcp.f32 %v752_v26  ;;  %v759_v24 = vadd.f32 1.0, %v2332_v3  ;;  %v3516_v26 = vld [vmem:[#allocation18_spill] sm:$0xff]  ;;  %v3518_v3 = vld [vmem:[#allocation21_spill] sm:$0xff] }
 0x239   :  { %2335 = vrcp.f32 %v759_v24 }
 0x244   :  { %v2334_v62 = vpop.eup %2333 }
 0x245   :  { %v763_v5 = vmul.f32 %v2334_v62, %v762_v45 }
 0x246   :  { %v2336_v40 = vpop.eup %2335 }
 0x247   :  { %v764_v9 = vadd.f32 %v763_v5, %v2872_v44  ;;  %v766_v50 = vsub.f32 1.0, %v2336_v40  ;;  %v768_v11 = vmul.f32 %v2336_v40, %v2896_v54  ;;  %v3513_v44 = vld [vmem:[#allocation17_spill] sm:$0xff]  ;;  %v3514_v54 = vld [vmem:[#allocation15_spill] sm:$0xff] }
 0x248   :  { %v3517_v5 = vld [vmem:[#allocation13_spill] sm:$0xff] }
 0x249   :  { %2337 = vtanh.f32 %v764_v9  ;;  %v3519_v9 = vld [vmem:[#allocation22_spill] sm:$0xff] }
 0x256   :  { %v2338_v43 = vpop.eup %2337 }
 0x257   :  { %v767_v22 = vmul.f32 %v2338_v43, %v766_v50 }
 0x259   :  { %v2972_v60 = vadd.f32 %v768_v11, %v767_v22 }
 0x25b   :  { %841 = vmatmul.mubr.f32.vlgmr.msra.gmra.mxu0 %v2972_v60  ;;  %2132 = vmatmul.mubr.f32.vlgmr.msra.gmra.mxu1 %v2972_v60 }
 0x25c   :  { %946 = vmatpush1.msra.mxu0 %v2588_v46  ;;  %2135 = vmatpush3.msra.mxu1 %v2688_v21 }
 0x25d   :  { %947 = vmatprep.subr.mxu0 %v2590_v47  ;;  %2136 = vmatprep.subr.mxu1 %v3504_v42 }
 0x25e   :  { %948 = vmatpush1.msra.mxu0 %v2594_v49  ;;  %2137 = vmatpush3.msra.mxu1 %v2705_v27 }
 0x25f   :  { %949 = vmatprep.subr.mxu0 %v2600_v51  ;;  %2138 = vmatprep.subr.mxu1 %v3504_v42 }
 0x260   :  { %950 = vmatpush1.msra.mxu0 %v2603_v52  ;;  %2139 = vmatpush3.msra.mxu1 %v2711_v28 }
 0x261   :  { %951 = vmatprep.subr.mxu0 %v2606_v53  ;;  %2140 = vmatprep.subr.mxu1 %v3504_v42 }
 0x262   :  { %952 = vmatpush1.msra.mxu0 %v2610_v55  ;;  %2141 = vmatpush3.msra.mxu1 %v2717_v29 }
 0x263   :  { %953 = vmatprep.subr.mxu0 %v2616_v57  ;;  %2142 = vmatprep.subr.mxu1 %v3504_v42 }
 0x264   :  { %954 = vmatpush1.msra.mxu0 %v2619_v58  ;;  %2143 = vmatpush3.msra.mxu1 %v2722_v30 }
 0x265   :  { %955 = vmatprep.subr.mxu0 %v2622_v59  ;;  %2144 = vmatprep.subr.mxu1 %v3504_v42 }
 0x266   :  { %956 = vmatpush1.msra.mxu0 %v2626_v61  ;;  %2145 = vmatpush3.msra.mxu1 %v2728_v31 }
 0x267   :  { %957 = vmatprep.subr.mxu0 %v2632_v63  ;;  %2146 = vmatprep.subr.mxu1 %v3504_v42 }
 0x268   :  { %958 = vmatpush1.msra.mxu0 %v2635_v1  ;;  %2147 = vmatpush3.msra.mxu1 %v2734_v32 }
 0x269   :  { %959 = vmatprep.subr.mxu0 %v2638_v2  ;;  %2148 = vmatprep.subr.mxu1 %v3504_v42 }
 0x26a   :  { %960 = vmatpush1.msra.mxu0 %v2642_v4  ;;  %2149 = vmatpush3.msra.mxu1 %v2738_v33 }
 0x26b   :  { %961 = vmatprep.subr.mxu0 %v2648_v6  ;;  %2150 = vmatprep.subr.mxu1 %v3504_v42 }
 0x26c   :  { %962 = vmatpush1.msra.mxu0 %v2651_v7  ;;  %2151 = vmatpush3.msra.mxu1 %v2744_v34 }
 0x26d   :  { %963 = vmatprep.subr.mxu0 %v2654_v8  ;;  %2152 = vmatprep.subr.mxu1 %v3504_v42 }
 0x26e   :  { %964 = vmatpush1.msra.mxu0 %v2658_v10  ;;  %2153 = vmatpush3.msra.mxu1 %v2750_v35 }
 0x26f   :  { %965 = vmatprep.subr.mxu0 %v2662_v12  ;;  %2154 = vmatprep.subr.mxu1 %v3504_v42 }
 0x270   :  { %966 = vmatpush1.msra.mxu0 %v2665_v13  ;;  %2155 = vmatpush3.msra.mxu1 %v2756_v36 }
 0x271   :  { %967 = vmatprep.subr.mxu0 %v2668_v14  ;;  %2156 = vmatprep.subr.mxu1 %v3504_v42 }
 0x272   :  { %968 = vmatpush1.msra.mxu0 %v2671_v15  ;;  %2157 = vmatpush3.msra.mxu1 %v2762_v37 }
 0x273   :  { %969 = vmatprep.subr.mxu0 %v2675_v17  ;;  %2158 = vmatprep.subr.mxu1 %v3504_v42 }
 0x274   :  { %970 = vmatpush1.msra.mxu0 %v2678_v18  ;;  %2159 = vmatpush3.msra.mxu1 %v2768_v38 }
 0x275   :  { %971 = vmatprep.subr.mxu0 %v2682_v19  ;;  %2160 = vmatprep.subr.mxu1 %v3504_v42 }
 0x276   :  { %972 = vmatpush1.msra.mxu0 %v2686_v20  ;;  %2161 = vmatpush3.msra.mxu1 %v2774_v39 }
 0x277   :  { %973 = vmatprep.subr.mxu0 %v2692_v23  ;;  %2162 = vmatprep.subr.mxu1 %v3504_v42 }
 0x278   :  { %974 = vmatpush1.msra.mxu0 %v3505_v16  ;;  %2163 = vmatpush3.msra.mxu1 %v3513_v44  ;;  %v3520_v44 = vld [vmem:[#allocation34_spill] sm:$0xff] }
 0x279   :  { %975 = vmatprep.subr.mxu0 %v3514_v54  ;;  %2164 = vmatprep.subr.mxu1 %v3504_v42 }
 0x27a   :  { %976 = vmatpush1.msra.mxu0 %v3515_v0  ;;  %1009 = vmatprep.mubr.f32.mxu0 %v3504_v42 }
 0x27b   :  { %2165 = vmatpush3.msra.mxu1 %v3516_v26  ;;  %2166 = vmatprep.mubr.msk.f32.mxu1 %vm2542_vm0, %v3504_v42 }
 0x27c   :  { %1114 = vmatprep.subr.mxu0 %v3517_v5  ;;  %2169 = vmatprep.subr.mxu1 %v3504_v42 }
 0x31b   :  { %v842_v62 = vpop.f32.mrf.mxu0  ;;  %v913_v24 = vpop.f32.mrf.mxu1 }
 0x31c   :  { %v917_v45 = vadd.f32 %v842_v62, %v3518_v3  ;;  %v931_v5 = vadd.f32 %v2893_v25, %v913_v24  ;;  %v3148_v24 = vld [vmem:[#allocation8 + $0x138] sm:$0xff] }
 0x31d   :  { %v2133_v41 = vpop.f32.mrf.mxu1  ;;  %v844_v56 = vpop.f32.mrf.mxu0 }
 0x31e   :  { %v1813_v48 = vmul.f32 -1.442695, %v917_v45  ;;  %v924_v40 = vadd.f32 %v844_v56, %v3519_v9 }
 0x320   :  { %2339 = vpow2.f32 %v1813_v48  ;;  %v1814_v50 = vmul.f32 -1.442695, %v924_v40  ;;  %v3152_v40 = vld [vmem:[#allocation8 + $0x128] sm:$0xff] }
 0x322   :  { %2341 = vpow2.f32 %v1814_v50  ;;  %v3156_v50 = vld [vmem:[#allocation8 + $0x120] sm:$0xff] }
 0x32d   :  { %v2340_v43 = vpop.eup %2339 }
 0x32e   :  { %v921_v22 = vadd.f32 1.0, %v2340_v43  ;;  %v3164_v43 = vld [vmem:[#allocation8 + $0x108] sm:$0xff] }
 0x32f   :  { %v2342_v11 = vpop.eup %2341 }
 0x330   :  { %2343 = vrcp.f32 %v921_v22  ;;  %v928_v26 = vadd.f32 1.0, %v2342_v11  ;;  %v3172_v22 = vld [vmem:[#allocation8 + $0xf0] sm:$0xff]  ;;  %v3180_v11 = vld [vmem:[#allocation8 + $0xd8] sm:$0xff] }
 0x332   :  { %2345 = vrcp.f32 %v928_v26  ;;  %v3144_v26 = vld [vmem:[#allocation8 + $0x140] sm:$0xff] }
 0x33d   :  { %v2344_v0 = vpop.eup %2343 }
 0x33e   :  { %v932_v54 = vmul.f32 %v2344_v0, %v931_v5  ;;  %v3140_v0 = vld [vmem:[#allocation8 + $0x150] sm:$0xff]  ;;  %v3188_v5 = vld [vmem:[#allocation8 + $0xc0] sm:$0xff] }
 0x33f   :  { %v2346_v3 = vpop.eup %2345 }
 0x340   :  { %v933_v62 = vadd.f32 %v932_v54, %v3520_v44  ;;  %v935_v45 = vsub.f32 1.0, %v2346_v3  ;;  %v937_v56 = vmul.f32 %v2346_v3, %v2972_v60  ;;  %v3130_v60 = vld [vmem:[#allocation8 + $0x168] sm:$0xff]  ;;  %v3133_v44 = vld [vmem:[#allocation8 + $0x178] sm:$0xff]  ;;  %v3204_v3 = vld [vmem:[#allocation8 + $0x90] sm:$0xff] }
 0x341   :  { %v3136_v54 = vld [vmem:[#allocation8 + $0x158] sm:$0xff] }
 0x342   :  { %2347 = vtanh.f32 %v933_v62  ;;  %v3196_v62 = vld [vmem:[#allocation8 + $0xa8] sm:$0xff] }
 0x34f   :  { %v2348_v41 = vpop.eup %2347 }
 0x350   :  { %v936_v48 = vmul.f32 %v2348_v41, %v935_v45  ;;  %v3212_v45 = vld [vmem:[#allocation8 + $0x78] sm:$0xff]  ;;  %v3220_v41 = vld [vmem:[#allocation8 + $0x60] sm:$0xff] }
 0x352   :  { %v3048_v9 = vadd.f32 %v937_v56, %v936_v48  ;;  %v3228_v48 = vld [vmem:[#allocation8 + $0x48] sm:$0xff]  ;;  %v3236_v56 = vld [vmem:[#allocation8 + $0x30] sm:$0xff] }
 0x354   :  { %1010 = vmatmul.mubr.f32.vlgmr.msra.gmra.mxu0 %v3048_v9  ;;  %2167 = vmatmul.mubr.f32.vlgmr.msra.gmra.mxu1 %v3048_v9 }
 0x355   :  { %1115 = vmatpush1.msra.mxu0 %v2588_v46  ;;  %2170 = vmatpush3.msra.mxu1 %v2688_v21  ;;  %v3521_v46 = vld [vmem:[#allocation17_spill] sm:$0xff] }
 0x356   :  { %1116 = vmatprep.subr.mxu0 %v2590_v47  ;;  %2171 = vmatprep.subr.mxu1 %v3504_v42  ;;  %v3522_v47 = vld [vmem:[#allocation15_spill] sm:$0xff] }
 0x357   :  { %1117 = vmatpush1.msra.mxu0 %v2594_v49  ;;  %2172 = vmatpush3.msra.mxu1 %v2705_v27  ;;  %v3523_v49 = vld [vmem:[#allocation16_spill] sm:$0xff] }
 0x358   :  { %1118 = vmatprep.subr.mxu0 %v2600_v51  ;;  %2173 = vmatprep.subr.mxu1 %v3504_v42  ;;  %v3524_v51 = vld [vmem:[#allocation18_spill] sm:$0xff] }
 0x359   :  { %1119 = vmatpush1.msra.mxu0 %v2603_v52  ;;  %2174 = vmatpush3.msra.mxu1 %v2711_v28  ;;  %v3117_v52 = vld [vmem:[#allocation8 + $0x170] sm:$0xff] }
 0x35a   :  { %1120 = vmatprep.subr.mxu0 %v2606_v53  ;;  %2175 = vmatprep.subr.mxu1 %v3504_v42 }
 0x35b   :  { %1121 = vmatpush1.msra.mxu0 %v2610_v55  ;;  %2176 = vmatpush3.msra.mxu1 %v2717_v29 }
 0x35c   :  { %1122 = vmatprep.subr.mxu0 %v2616_v57  ;;  %2177 = vmatprep.subr.mxu1 %v3504_v42  ;;  %v3525_v57 = vld [vmem:[#allocation23_spill] sm:$0xff] }
 0x35d   :  { %1123 = vmatpush1.msra.mxu0 %v2619_v58  ;;  %2178 = vmatpush3.msra.mxu1 %v2722_v30 }
 0x35e   :  { %1124 = vmatprep.subr.mxu0 %v2622_v59  ;;  %2179 = vmatprep.subr.mxu1 %v3504_v42 }
 0x35f   :  { %1125 = vmatpush1.msra.mxu0 %v2626_v61  ;;  %2180 = vmatpush3.msra.mxu1 %v2728_v31 }
 0x360   :  { %1126 = vmatprep.subr.mxu0 %v2632_v63  ;;  %2181 = vmatprep.subr.mxu1 %v3504_v42 }
 0x361   :  { %1127 = vmatpush1.msra.mxu0 %v2635_v1  ;;  %2182 = vmatpush3.msra.mxu1 %v2734_v32  ;;  %v3526_v1 = vld [vmem:[#allocation24_spill] sm:$0xff] }
 0x362   :  { %1128 = vmatprep.subr.mxu0 %v2638_v2  ;;  %2183 = vmatprep.subr.mxu1 %v3504_v42 }
 0x363   :  { %1129 = vmatpush1.msra.mxu0 %v2642_v4  ;;  %2184 = vmatpush3.msra.mxu1 %v2738_v33 }
 0x364   :  { %1130 = vmatprep.subr.mxu0 %v2648_v6  ;;  %2185 = vmatprep.subr.mxu1 %v3504_v42 }
 0x365   :  { %1131 = vmatpush1.msra.mxu0 %v2651_v7  ;;  %2186 = vmatpush3.msra.mxu1 %v2744_v34 }
 0x366   :  { %1132 = vmatprep.subr.mxu0 %v2654_v8  ;;  %2187 = vmatprep.subr.mxu1 %v3504_v42 }
 0x367   :  { %1133 = vmatpush1.msra.mxu0 %v2658_v10  ;;  %2188 = vmatpush3.msra.mxu1 %v2750_v35 }
 0x368   :  { %1134 = vmatprep.subr.mxu0 %v2662_v12  ;;  %2189 = vmatprep.subr.mxu1 %v3504_v42 }
 0x369   :  { %1135 = vmatpush1.msra.mxu0 %v2665_v13  ;;  %2190 = vmatpush3.msra.mxu1 %v2756_v36 }
 0x36a   :  { %1136 = vmatprep.subr.mxu0 %v2668_v14  ;;  %2191 = vmatprep.subr.mxu1 %v3504_v42 }
 0x36b   :  { %1137 = vmatpush1.msra.mxu0 %v2671_v15  ;;  %2192 = vmatpush3.msra.mxu1 %v2762_v37  ;;  %v3527_v15 = vld [vmem:[#allocation33_spill] sm:$0xff] }
 0x36c   :  { %1138 = vmatprep.subr.mxu0 %v2675_v17  ;;  %2193 = vmatprep.subr.mxu1 %v3504_v42 }
 0x36d   :  { %1139 = vmatpush1.msra.mxu0 %v2678_v18  ;;  %2194 = vmatpush3.msra.mxu1 %v2768_v38 }
 0x36e   :  { %1140 = vmatprep.subr.mxu0 %v2682_v19  ;;  %2195 = vmatprep.subr.mxu1 %v3504_v42 }
 0x36f   :  { %1141 = vmatpush1.msra.mxu0 %v2686_v20  ;;  %2196 = vmatpush3.msra.mxu1 %v2774_v39 }
 0x370   :  { %1142 = vmatprep.subr.mxu0 %v2692_v23  ;;  %2197 = vmatprep.subr.mxu1 %v3504_v42 }
 0x371   :  { %1143 = vmatpush1.msra.mxu0 %v3505_v16  ;;  %2198 = vmatpush3.msra.mxu1 %v3521_v46 }
 0x372   :  { %1144 = vmatprep.subr.mxu0 %v3522_v47  ;;  %2199 = vmatprep.subr.mxu1 %v3504_v42  ;;  %v3252_v47 = vld [vmem:[#allocation8] sm:$0xff] }
 0x373   :  { %1145 = vmatpush1.msra.mxu0 %v3523_v49  ;;  %1178 = vmatprep.mubr.f32.mxu0 %v3504_v42  ;;  %3529 = vst [vmem:[#allocation19_spill] sm:$0xff] %v3252_v47  ;;  %v3530_v49 = vld [vmem:[#allocation25_spill] sm:$0xff] }
 0x374   :  { %2200 = vmatpush3.msra.mxu1 %v3524_v51  ;;  %2201 = vmatprep.mubr.msk.f32.mxu1 %vm2542_vm0, %v3504_v42 }
 0x375   :  { %1283 = vmatprep.subr.mxu0 %v3117_v52  ;;  %2204 = vmatprep.subr.mxu1 %v3504_v42 }
 0x414   :  { %v1011_v53 = vpop.f32.mrf.mxu0  ;;  %v1082_v55 = vpop.f32.mrf.mxu1 }
 0x415   :  { %v1086_v58 = vadd.f32 %v1011_v53, %v3525_v57  ;;  %v1100_v12 = vadd.f32 %v2893_v25, %v1082_v55 }
 0x416   :  { %v2168_v59 = vpop.f32.mrf.mxu1  ;;  %v1013_v63 = vpop.f32.mrf.mxu0 }
 0x417   :  { %v1815_v61 = vmul.f32 -1.442695, %v1086_v58  ;;  %v1093_v2 = vadd.f32 %v1013_v63, %v3526_v1  ;;  %v3531_v59 = vld [vmem:[#allocation26_spill] sm:$0xff] }
 0x419   :  { %2349 = vpow2.f32 %v1815_v61  ;;  %v1816_v4 = vmul.f32 -1.442695, %v1093_v2 }
 0x41b   :  { %2351 = vpow2.f32 %v1816_v4 }
 0x426   :  { %v2350_v6 = vpop.eup %2349 }
 0x427   :  { %v1090_v7 = vadd.f32 1.0, %v2350_v6 }
 0x428   :  { %v2352_v8 = vpop.eup %2351 }
 0x429   :  { %2353 = vrcp.f32 %v1090_v7  ;;  %v1097_v10 = vadd.f32 1.0, %v2352_v8 }
 0x42b   :  { %2355 = vrcp.f32 %v1097_v10  ;;  %v3532_v10 = vld [vmem:[#allocation36_spill] sm:$0xff] }
 0x436   :  { %v2354_v13 = vpop.eup %2353 }
 0x437   :  { %v1101_v14 = vmul.f32 %v2354_v13, %v1100_v12 }
 0x438   :  { %v2356_v18 = vpop.eup %2355 }
 0x439   :  { %v1102_v17 = vadd.f32 %v1101_v14, %v3527_v15  ;;  %v1104_v19 = vsub.f32 1.0, %v2356_v18  ;;  %v1106_v23 = vmul.f32 %v2356_v18, %v3048_v9  ;;  %v3244_v9 = vld [vmem:[#allocation8 + $0x18] sm:$0xff] }
 0x43b   :  { %2357 = vtanh.f32 %v1102_v17 }
 0x448   :  { %v2358_v20 = vpop.eup %2357 }
 0x449   :  { %v1105_v21 = vmul.f32 %v2358_v20, %v1104_v19  ;;  %v3275_v20 = vld [vmem:[#allocation8 + $0x160] sm:$0xff] }
 0x44b   :  { %v3126_v16 = vadd.f32 %v1106_v23, %v1105_v21  ;;  %v3281_v21 = vld [vmem:[#allocation8 + $0x148] sm:$0xff]  ;;  %v3287_v23 = vld [vmem:[#allocation8 + $0x130] sm:$0xff] }
 0x44d   :  { %1179 = vmatmul.mubr.f32.vlgmr.msra.gmra.mxu0 %v3126_v16  ;;  %2202 = vmatmul.mubr.f32.vlgmr.msra.gmra.mxu1 %v3126_v16 }
 0x44e   :  { %1284 = vmatpush1.msra.mxu0 %v3130_v60  ;;  %2205 = vmatpush3.msra.mxu1 %v3133_v44 }
 0x44f   :  { %1285 = vmatprep.subr.mxu0 %v3136_v54  ;;  %2206 = vmatprep.subr.mxu1 %v3504_v42 }
 0x450   :  { %1286 = vmatpush1.msra.mxu0 %v3140_v0  ;;  %2207 = vmatpush3.msra.mxu1 %v2705_v27  ;;  %v3160_v27 = vld [vmem:[#allocation8 + $0x110] sm:$0xff] }
 0x451   :  { %1287 = vmatprep.subr.mxu0 %v3144_v26  ;;  %2208 = vmatprep.subr.mxu1 %v3504_v42 }
 0x452   :  { %1288 = vmatpush1.msra.mxu0 %v3148_v24  ;;  %2209 = vmatpush3.msra.mxu1 %v2711_v28  ;;  %v3168_v28 = vld [vmem:[#allocation8 + $0xf8] sm:$0xff] }
 0x453   :  { %1289 = vmatprep.subr.mxu0 %v3152_v40  ;;  %2210 = vmatprep.subr.mxu1 %v3504_v42 }
 0x454   :  { %1290 = vmatpush1.msra.mxu0 %v3156_v50  ;;  %2211 = vmatpush3.msra.mxu1 %v2717_v29  ;;  %v3176_v29 = vld [vmem:[#allocation8 + $0xe0] sm:$0xff] }
 0x455   :  { %1291 = vmatprep.subr.mxu0 %v3160_v27  ;;  %2212 = vmatprep.subr.mxu1 %v3504_v42 }
 0x456   :  { %1292 = vmatpush1.msra.mxu0 %v3164_v43  ;;  %2213 = vmatpush3.msra.mxu1 %v2722_v30  ;;  %v3184_v30 = vld [vmem:[#allocation8 + $0xc8] sm:$0xff] }
 0x457   :  { %1293 = vmatprep.subr.mxu0 %v3168_v28  ;;  %2214 = vmatprep.subr.mxu1 %v3504_v42 }
 0x458   :  { %1294 = vmatpush1.msra.mxu0 %v3172_v22  ;;  %2215 = vmatpush3.msra.mxu1 %v2728_v31  ;;  %v3192_v31 = vld [vmem:[#allocation8 + $0xb0] sm:$0xff] }
 0x459   :  { %1295 = vmatprep.subr.mxu0 %v3176_v29  ;;  %2216 = vmatprep.subr.mxu1 %v3504_v42 }
 0x45a   :  { %1296 = vmatpush1.msra.mxu0 %v3180_v11  ;;  %2217 = vmatpush3.msra.mxu1 %v2734_v32  ;;  %v3200_v32 = vld [vmem:[#allocation8 + $0x98] sm:$0xff] }
 0x45b   :  { %1297 = vmatprep.subr.mxu0 %v3184_v30  ;;  %2218 = vmatprep.subr.mxu1 %v3504_v42 }
 0x45c   :  { %1298 = vmatpush1.msra.mxu0 %v3188_v5  ;;  %2219 = vmatpush3.msra.mxu1 %v2738_v33  ;;  %v3208_v33 = vld [vmem:[#allocation8 + $0x80] sm:$0xff] }
 0x45d   :  { %1299 = vmatprep.subr.mxu0 %v3192_v31  ;;  %2220 = vmatprep.subr.mxu1 %v3504_v42 }
 0x45e   :  { %1300 = vmatpush1.msra.mxu0 %v3196_v62  ;;  %2221 = vmatpush3.msra.mxu1 %v2744_v34  ;;  %v3216_v34 = vld [vmem:[#allocation8 + $0x68] sm:$0xff] }
 0x45f   :  { %1301 = vmatprep.subr.mxu0 %v3200_v32  ;;  %2222 = vmatprep.subr.mxu1 %v3504_v42 }
 0x460   :  { %1302 = vmatpush1.msra.mxu0 %v3204_v3  ;;  %2223 = vmatpush3.msra.mxu1 %v2750_v35  ;;  %v3224_v35 = vld [vmem:[#allocation8 + $0x50] sm:$0xff] }
 0x461   :  { %1303 = vmatprep.subr.mxu0 %v3208_v33  ;;  %2224 = vmatprep.subr.mxu1 %v3504_v42 }
 0x462   :  { %1304 = vmatpush1.msra.mxu0 %v3212_v45  ;;  %2225 = vmatpush3.msra.mxu1 %v2756_v36  ;;  %v3232_v36 = vld [vmem:[#allocation8 + $0x38] sm:$0xff] }
 0x463   :  { %1305 = vmatprep.subr.mxu0 %v3216_v34  ;;  %2226 = vmatprep.subr.mxu1 %v3504_v42 }
 0x464   :  { %1306 = vmatpush1.msra.mxu0 %v3220_v41  ;;  %2227 = vmatpush3.msra.mxu1 %v2762_v37  ;;  %v3240_v37 = vld [vmem:[#allocation8 + $0x20] sm:$0xff] }
 0x465   :  { %1307 = vmatprep.subr.mxu0 %v3224_v35  ;;  %2228 = vmatprep.subr.mxu1 %v3504_v42 }
 0x466   :  { %1308 = vmatpush1.msra.mxu0 %v3228_v48  ;;  %2229 = vmatpush3.msra.mxu1 %v2768_v38  ;;  %v3248_v38 = vld [vmem:[#allocation8 + $0x8] sm:$0xff] }
 0x467   :  { %1309 = vmatprep.subr.mxu0 %v3232_v36  ;;  %2230 = vmatprep.subr.mxu1 %v3504_v42  ;;  %3528 = vst [vmem:[#allocation14_spill] sm:$0xff] %v3248_v38 }
 0x468   :  { %1310 = vmatpush1.msra.mxu0 %v3236_v56  ;;  %2231 = vmatpush3.msra.mxu1 %v2774_v39 }
 0x469   :  { %1311 = vmatprep.subr.mxu0 %v3240_v37  ;;  %2232 = vmatprep.subr.mxu1 %v3504_v42 }
 0x46a   :  { %1312 = vmatpush1.msra.mxu0 %v3244_v9  ;;  %2233 = vmatpush3.msra.mxu1 %v3521_v46 }
 0x46b   :  { %1313 = vmatprep.subr.mxu0 %v3248_v38  ;;  %2234 = vmatprep.subr.mxu1 %v3504_v42 }
 0x46c   :  { %1314 = vmatpush1.msra.mxu0 %v3252_v47  ;;  %1347 = vmatprep.mubr.f32.mxu0 %v3504_v42 }
 0x46d   :  { %2235 = vmatpush3.msra.mxu1 %v3524_v51  ;;  %2236 = vmatprep.mubr.msk.f32.mxu1 %vm2542_vm0, %v3504_v42 }
 0x46e   :  { %1452 = vmatprep.subr.mxu0 %v3117_v52  ;;  %2239 = vmatprep.subr.mxu1 %v3504_v42 }
 0x50d   :  { %v1180_v39 = vpop.f32.mrf.mxu0  ;;  %v1251_v46 = vpop.f32.mrf.mxu1 }
 0x50e   :  { %v1255_v53 = vadd.f32 %v1180_v39, %v3530_v49  ;;  %v1269_v6 = vadd.f32 %v2893_v25, %v1251_v46  ;;  %v3299_v39 = vld [vmem:[#allocation8 + $0x100] sm:$0xff]  ;;  %v3305_v46 = vld [vmem:[#allocation8 + $0xe8] sm:$0xff]  ;;  %v3311_v49 = vld [vmem:[#allocation8 + $0xd0] sm:$0xff] }
 0x50f   :  { %v2203_v55 = vpop.f32.mrf.mxu1  ;;  %v1182_v58 = vpop.f32.mrf.mxu0 }
 0x510   :  { %v1817_v57 = vmul.f32 -1.442695, %v1255_v53  ;;  %v1262_v61 = vadd.f32 %v1182_v58, %v3531_v59  ;;  %v3317_v53 = vld [vmem:[#allocation8 + $0xb8] sm:$0xff]  ;;  %v3323_v55 = vld [vmem:[#allocation8 + $0xa0] sm:$0xff]  ;;  %v3335_v58 = vld [vmem:[#allocation8 + $0x70] sm:$0xff] }
 0x511   :  { %v3341_v59 = vld [vmem:[#allocation8 + $0x58] sm:$0xff] }
 0x512   :  { %2359 = vpow2.f32 %v1817_v57  ;;  %v1818_v63 = vmul.f32 -1.442695, %v1262_v61  ;;  %v3329_v57 = vld [vmem:[#allocation8 + $0x88] sm:$0xff]  ;;  %v3347_v61 = vld [vmem:[#allocation8 + $0x40] sm:$0xff] }
 0x514   :  { %2361 = vpow2.f32 %v1818_v63  ;;  %v3353_v63 = vld [vmem:[#allocation8 + $0x28] sm:$0xff] }
 0x515   :  { %3533 = vst [vmem:[#allocation20_spill] sm:$0xff] %v3353_v63 }
 0x51f   :  { %v2360_v51 = vpop.eup %2359 }
 0x520   :  { %v1259_v1 = vadd.f32 1.0, %v2360_v51  ;;  %v3360_v51 = vld [vmem:[#allocation8 + $0x10] sm:$0xff] }
 0x521   :  { %v2362_v2 = vpop.eup %2361  ;;  %3534 = vst [vmem:[#allocation13_spill] sm:$0xff] %v3360_v51 }
 0x522   :  { %2363 = vrcp.f32 %v1259_v1  ;;  %v1266_v4 = vadd.f32 1.0, %v2362_v2 }
 0x524   :  { %2365 = vrcp.f32 %v1266_v4  ;;  %v3535_v4 = vld [vmem:[#allocation27_spill] sm:$0xff] }
 0x52f   :  { %v2364_v7 = vpop.eup %2363 }
 0x530   :  { %v1270_v8 = vmul.f32 %v2364_v7, %v1269_v6 }
 0x531   :  { %v2366_v13 = vpop.eup %2365 }
 0x532   :  { %v1271_v12 = vadd.f32 %v1270_v8, %v3532_v10  ;;  %v1273_v14 = vsub.f32 1.0, %v2366_v13  ;;  %v1275_v18 = vmul.f32 %v2366_v13, %v3126_v16  ;;  %v3293_v16 = vld [vmem:[#allocation8 + $0x118] sm:$0xff] }
 0x534   :  { %2367 = vtanh.f32 %v1271_v12  ;;  %v3536_v12 = vld [vmem:[#allocation28_spill] sm:$0xff] }
 0x541   :  { %v2368_v15 = vpop.eup %2367 }
 0x542   :  { %v1274_v17 = vmul.f32 %v2368_v15, %v1273_v14 }
 0x544   :  { %v3266_v19 = vadd.f32 %v1275_v18, %v1274_v17 }
 0x546   :  { %1348 = vmatmul.mubr.f32.vlgmr.msra.gmra.mxu0 %v3266_v19  ;;  %2237 = vmatmul.mubr.f32.vlgmr.msra.gmra.mxu1 %v3266_v19 }
 0x547   :  { %1453 = vmatpush1.msra.mxu0 %v3130_v60  ;;  %2240 = vmatpush3.msra.mxu1 %v3133_v44 }
 0x548   :  { %1454 = vmatprep.subr.mxu0 %v3136_v54  ;;  %2241 = vmatprep.subr.mxu1 %v3504_v42 }
 0x549   :  { %1455 = vmatpush1.msra.mxu0 %v3140_v0  ;;  %2242 = vmatpush3.msra.mxu1 %v3275_v20 }
 0x54a   :  { %1456 = vmatprep.subr.mxu0 %v3144_v26  ;;  %2243 = vmatprep.subr.mxu1 %v3504_v42 }
 0x54b   :  { %1457 = vmatpush1.msra.mxu0 %v3148_v24  ;;  %2244 = vmatpush3.msra.mxu1 %v3281_v21 }
 0x54c   :  { %1458 = vmatprep.subr.mxu0 %v3152_v40  ;;  %2245 = vmatprep.subr.mxu1 %v3504_v42 }
 0x54d   :  { %1459 = vmatpush1.msra.mxu0 %v3156_v50  ;;  %2246 = vmatpush3.msra.mxu1 %v3287_v23 }
 0x54e   :  { %1460 = vmatprep.subr.mxu0 %v3160_v27  ;;  %2247 = vmatprep.subr.mxu1 %v3504_v42 }
 0x54f   :  { %1461 = vmatpush1.msra.mxu0 %v3164_v43  ;;  %2248 = vmatpush3.msra.mxu1 %v3293_v16 }
 0x550   :  { %1462 = vmatprep.subr.mxu0 %v3168_v28  ;;  %2249 = vmatprep.subr.mxu1 %v3504_v42 }
 0x551   :  { %1463 = vmatpush1.msra.mxu0 %v3172_v22  ;;  %2250 = vmatpush3.msra.mxu1 %v3299_v39 }
 0x552   :  { %1464 = vmatprep.subr.mxu0 %v3176_v29  ;;  %2251 = vmatprep.subr.mxu1 %v3504_v42 }
 0x553   :  { %1465 = vmatpush1.msra.mxu0 %v3180_v11  ;;  %2252 = vmatpush3.msra.mxu1 %v3305_v46 }
 0x554   :  { %1466 = vmatprep.subr.mxu0 %v3184_v30  ;;  %2253 = vmatprep.subr.mxu1 %v3504_v42 }
 0x555   :  { %1467 = vmatpush1.msra.mxu0 %v3188_v5  ;;  %2254 = vmatpush3.msra.mxu1 %v3311_v49 }
 0x556   :  { %1468 = vmatprep.subr.mxu0 %v3192_v31  ;;  %2255 = vmatprep.subr.mxu1 %v3504_v42 }
 0x557   :  { %1469 = vmatpush1.msra.mxu0 %v3196_v62  ;;  %2256 = vmatpush3.msra.mxu1 %v3317_v53 }
 0x558   :  { %1470 = vmatprep.subr.mxu0 %v3200_v32  ;;  %2257 = vmatprep.subr.mxu1 %v3504_v42 }
 0x559   :  { %1471 = vmatpush1.msra.mxu0 %v3204_v3  ;;  %2258 = vmatpush3.msra.mxu1 %v3323_v55 }
 0x55a   :  { %1472 = vmatprep.subr.mxu0 %v3208_v33  ;;  %2259 = vmatprep.subr.mxu1 %v3504_v42 }
 0x55b   :  { %1473 = vmatpush1.msra.mxu0 %v3212_v45  ;;  %2260 = vmatpush3.msra.mxu1 %v3329_v57 }
 0x55c   :  { %1474 = vmatprep.subr.mxu0 %v3216_v34  ;;  %2261 = vmatprep.subr.mxu1 %v3504_v42 }
 0x55d   :  { %1475 = vmatpush1.msra.mxu0 %v3220_v41  ;;  %2262 = vmatpush3.msra.mxu1 %v3335_v58 }
 0x55e   :  { %1476 = vmatprep.subr.mxu0 %v3224_v35  ;;  %2263 = vmatprep.subr.mxu1 %v3504_v42 }
 0x55f   :  { %1477 = vmatpush1.msra.mxu0 %v3228_v48  ;;  %2264 = vmatpush3.msra.mxu1 %v3341_v59 }
 0x560   :  { %1478 = vmatprep.subr.mxu0 %v3232_v36  ;;  %2265 = vmatprep.subr.mxu1 %v3504_v42 }
 0x561   :  { %1479 = vmatpush1.msra.mxu0 %v3236_v56  ;;  %2266 = vmatpush3.msra.mxu1 %v3347_v61 }
 0x562   :  { %1480 = vmatprep.subr.mxu0 %v3240_v37  ;;  %2267 = vmatprep.subr.mxu1 %v3504_v42 }
 0x563   :  { %1481 = vmatpush1.msra.mxu0 %v3244_v9  ;;  %2268 = vmatpush3.msra.mxu1 %v3353_v63  ;;  %v3537_v63 = vld [vmem:[#allocation35_spill] sm:$0xff] }
 0x564   :  { %1482 = vmatprep.subr.mxu0 %v3248_v38  ;;  %2269 = vmatprep.subr.mxu1 %v3504_v42 }
 0x565   :  { %1483 = vmatpush1.msra.mxu0 %v3252_v47  ;;  %1516 = vmatprep.mubr.f32.mxu0 %v3504_v42 }
 0x566   :  { %2270 = vmatpush3.msra.mxu1 %v3360_v51  ;;  %2271 = vmatprep.mubr.msk.f32.mxu1 %vm2542_vm0, %v3504_v42 }
 0x567   :  { %1621 = vmatprep.subr.mxu0 %v3117_v52  ;;  %2274 = vmatprep.subr.mxu1 %v3504_v42 }
 0x606   :  { %v1349_v1 = vpop.f32.mrf.mxu0  ;;  %v1420_v2 = vpop.f32.mrf.mxu1 }
 0x607   :  { %v1424_v6 = vadd.f32 %v1349_v1, %v3535_v4  ;;  %v1438_v52 = vadd.f32 %v2893_v25, %v1420_v2  ;;  %v3538_v25 = vld [vmem:[#allocation20_spill] sm:$0xff] }
 0x608   :  { %v2238_v7 = vpop.f32.mrf.mxu1  ;;  %v1351_v10 = vpop.f32.mrf.mxu0 }
 0x609   :  { %v1819_v8 = vmul.f32 -1.442695, %v1424_v6  ;;  %v1431_v13 = vadd.f32 %v1351_v10, %v3536_v12 }
 0x60b   :  { %2369 = vpow2.f32 %v1819_v8  ;;  %v1820_v14 = vmul.f32 -1.442695, %v1431_v13 }
 0x60d   :  { %2371 = vpow2.f32 %v1820_v14 }
 0x618   :  { %v2370_v15 = vpop.eup %2369 }
 0x619   :  { %v1428_v17 = vadd.f32 1.0, %v2370_v15 }
 0x61a   :  { %v2372_v18 = vpop.eup %2371 }
 0x61b   :  { %2373 = vrcp.f32 %v1428_v17  ;;  %v1435_v51 = vadd.f32 1.0, %v2372_v18 }
 0x61d   :  { %2375 = vrcp.f32 %v1435_v51 }
 0x628   :  { %v2374_v47 = vpop.eup %2373 }
 0x629   :  { %v1439_v38 = vmul.f32 %v2374_v47, %v1438_v52 }
 0x62a   :  { %v2376_v4 = vpop.eup %2375 }
 0x62b   :  { %v1440_v1 = vadd.f32 %v1439_v38, %v3537_v63  ;;  %v1442_v6 = vsub.f32 1.0, %v2376_v4  ;;  %v1444_v10 = vmul.f32 %v2376_v4, %v3266_v19  ;;  %v3545_v38 = vld [vmem:[#allocation31_spill] sm:$0xff] }
 0x62d   :  { %2377 = vtanh.f32 %v1440_v1 }
 0x63a   :  { %v2378_v7 = vpop.eup %2377 }
 0x63b   :  { %v1443_v8 = vmul.f32 %v2378_v7, %v1442_v6 }
 0x63d   :  { %v3372_v12 = vadd.f32 %v1444_v10, %v1443_v8 }
 0x63f   :  { %1517 = vmatmul.mubr.f32.vlgmr.msra.gmra.mxu0 %v3372_v12  ;;  %2272 = vmatmul.mubr.f32.vlgmr.msra.gmra.mxu1 %v3372_v12 }
 0x640   :  { %1622 = vmatpush1.msra.mxu0 %v3130_v60  ;;  %2275 = vmatpush3.msra.mxu1 %v3133_v44  ;;  %v3539_v60 = vld [vmem:[#allocation14_spill] sm:$0xff]  ;;  %v3540_v44 = vld [vmem:[#allocation19_spill] sm:$0xff] }
 0x641   :  { %1623 = vmatprep.subr.mxu0 %v3136_v54  ;;  %2276 = vmatprep.subr.mxu1 %v3504_v42  ;;  %v3541_v54 = vld [vmem:[#allocation13_spill] sm:$0xff] }
 0x642   :  { %1624 = vmatpush1.msra.mxu0 %v3140_v0  ;;  %2277 = vmatpush3.msra.mxu1 %v3275_v20 }
 0x643   :  { %1625 = vmatprep.subr.mxu0 %v3144_v26  ;;  %2278 = vmatprep.subr.mxu1 %v3504_v42 }
 0x644   :  { %1626 = vmatpush1.msra.mxu0 %v3148_v24  ;;  %2279 = vmatpush3.msra.mxu1 %v3281_v21  ;;  %v3542_v24 = vld [vmem:[#allocation29_spill] sm:$0xff] }
 0x645   :  { %1627 = vmatprep.subr.mxu0 %v3152_v40  ;;  %2280 = vmatprep.subr.mxu1 %v3504_v42 }
 0x646   :  { %1628 = vmatpush1.msra.mxu0 %v3156_v50  ;;  %2281 = vmatpush3.msra.mxu1 %v3287_v23  ;;  %v3546_v23 = vld [vmem:[#allocation32_spill] sm:$0xff] }
 0x647   :  { %1629 = vmatprep.subr.mxu0 %v3160_v27  ;;  %2282 = vmatprep.subr.mxu1 %v3504_v42 }
 0x648   :  { %1630 = vmatpush1.msra.mxu0 %v3164_v43  ;;  %2283 = vmatpush3.msra.mxu1 %v3293_v16 }
 0x649   :  { %1631 = vmatprep.subr.mxu0 %v3168_v28  ;;  %2284 = vmatprep.subr.mxu1 %v3504_v42  ;;  %v3543_v28 = vld [vmem:[#allocation30_spill] sm:$0xff] }
 0x64a   :  { %1632 = vmatpush1.msra.mxu0 %v3172_v22  ;;  %2285 = vmatpush3.msra.mxu1 %v3299_v39 }
 0x64b   :  { %1633 = vmatprep.subr.mxu0 %v3176_v29  ;;  %2286 = vmatprep.subr.mxu1 %v3504_v42 }
 0x64c   :  { %1634 = vmatpush1.msra.mxu0 %v3180_v11  ;;  %2287 = vmatpush3.msra.mxu1 %v3305_v46 }
 0x64d   :  { %1635 = vmatprep.subr.mxu0 %v3184_v30  ;;  %2288 = vmatprep.subr.mxu1 %v3504_v42 }
 0x64e   :  { %1636 = vmatpush1.msra.mxu0 %v3188_v5  ;;  %2289 = vmatpush3.msra.mxu1 %v3311_v49 }
 0x64f   :  { %1637 = vmatprep.subr.mxu0 %v3192_v31  ;;  %2290 = vmatprep.subr.mxu1 %v3504_v42 }
 0x650   :  { %1638 = vmatpush1.msra.mxu0 %v3196_v62  ;;  %2291 = vmatpush3.msra.mxu1 %v3317_v53 }
 0x651   :  { %1639 = vmatprep.subr.mxu0 %v3200_v32  ;;  %2292 = vmatprep.subr.mxu1 %v3504_v42 }
 0x652   :  { %1640 = vmatpush1.msra.mxu0 %v3204_v3  ;;  %2293 = vmatpush3.msra.mxu1 %v3323_v55 }
 0x653   :  { %1641 = vmatprep.subr.mxu0 %v3208_v33  ;;  %2294 = vmatprep.subr.mxu1 %v3504_v42  ;;  %v3544_v33 = vld [vmem:[#allocation38_spill] sm:$0xff] }
 0x654   :  { %1642 = vmatpush1.msra.mxu0 %v3212_v45  ;;  %2295 = vmatpush3.msra.mxu1 %v3329_v57 }
 0x655   :  { %1643 = vmatprep.subr.mxu0 %v3216_v34  ;;  %2296 = vmatprep.subr.mxu1 %v3504_v42 }
 0x656   :  { %1644 = vmatpush1.msra.mxu0 %v3220_v41  ;;  %2297 = vmatpush3.msra.mxu1 %v3335_v58 }
 0x657   :  { %1645 = vmatprep.subr.mxu0 %v3224_v35  ;;  %2298 = vmatprep.subr.mxu1 %v3504_v42 }
 0x658   :  { %1646 = vmatpush1.msra.mxu0 %v3228_v48  ;;  %2299 = vmatpush3.msra.mxu1 %v3341_v59 }
 0x659   :  { %1647 = vmatprep.subr.mxu0 %v3232_v36  ;;  %2300 = vmatprep.subr.mxu1 %v3504_v42 }
 0x65a   :  { %1648 = vmatpush1.msra.mxu0 %v3236_v56  ;;  %2301 = vmatpush3.msra.mxu1 %v3347_v61  ;;  %v3547_v61 = vld [vmem:[#allocation37_spill] sm:$0xff] }
 0x65b   :  { %1649 = vmatprep.subr.mxu0 %v3240_v37  ;;  %2302 = vmatprep.subr.mxu1 %v3504_v42 }
 0x65c   :  { %1650 = vmatpush1.msra.mxu0 %v3244_v9  ;;  %2303 = vmatpush3.msra.mxu1 %v3538_v25 }
 0x65d   :  { %1651 = vmatprep.subr.mxu0 %v3539_v60  ;;  %2304 = vmatprep.subr.mxu1 %v3504_v42 }
 0x65e   :  { %1652 = vmatpush1.msra.mxu0 %v3540_v44  ;;  %1685 = vmatprep.mubr.f32.mxu0 %v3504_v42 }
 0x65f   :  { %2305 = vmatpush3.msra.mxu1 %v3541_v54  ;;  %2306 = vmatprep.mubr.msk.f32.mxu1 %vm2542_vm0, %v3504_v42  ;;  %v2447_v42 = vld [vmem:[%s3458_s4] ss:$0 sm:$0xff]  ;;  %s2543_s4 = smov [#allocation9]  }
 0x660   :  { %s1791_s14 = sshll.u32 %s2543_s4, 4  ;;  %s1792_s14 = int_to_ptr.vmem [resolvable:$true] %s1791_s14 }
 0x661   :  { %s2508_s15 = scalar_lea.vmem %s1792_s14, 128  ;;  %p2513_p2 = scmp.lt.s32.totalorder %s1792_s14, %s1792_s14 }
 0x662   :  { %p2509_p1 = scmp.ne.s32.totalorder %s1792_s14, %s2508_s15  ;;  %p2514_p3 = scmp.lt.s32.totalorder %s2508_s15, %s2508_s15 }
 0x664   :  { %p2515_p4 = por %p2514_p3, %p2513_p2 }
 0x666   :  { %p2516_p5 = pnand %p2515_p4, %p2509_p1 }
 0x6ff   :  { %v1518_v0 = vpop.f32.mrf.mxu0  ;;  %v1589_v26 = vpop.f32.mrf.mxu1 }
 0x700   :  { %v1593_v40 = vadd.f32 %v1518_v0, %v3542_v24  ;;  %v1607_v62 = vadd.f32 %v2447_v42, %v1589_v26 }
 0x701   :  { %v2273_v50 = vpop.f32.mrf.mxu1  ;;  %v1520_v43 = vpop.f32.mrf.mxu0 }
 0x702   :  { %v1821_v27 = vmul.f32 -1.442695, %v1593_v40  ;;  %v1600_v22 = vadd.f32 %v1520_v43, %v3543_v28 }
 0x704   :  { %2379 = vpow2.f32 %v1821_v27  ;;  %v1822_v29 = vmul.f32 -1.442695, %v1600_v22 }
 0x706   :  { %2381 = vpow2.f32 %v1822_v29 }
 0x711   :  { %v2380_v11 = vpop.eup %2379 }
 0x712   :  { %v1597_v30 = vadd.f32 1.0, %v2380_v11 }
 0x713   :  { %v2382_v5 = vpop.eup %2381 }
 0x714   :  { %2383 = vrcp.f32 %v1597_v30  ;;  %v1604_v31 = vadd.f32 1.0, %v2382_v5 }
 0x716   :  { %2385 = vrcp.f32 %v1604_v31 }
 0x721   :  { %v2384_v32 = vpop.eup %2383 }
 0x722   :  { %v1608_v3 = vmul.f32 %v2384_v32, %v1607_v62 }
 0x723   :  { %v2386_v34 = vpop.eup %2385 }
 0x724   :  { %v1609_v45 = vadd.f32 %v1608_v3, %v3544_v33  ;;  %v1611_v41 = vsub.f32 1.0, %v2386_v34  ;;  %v1613_v36 = vmul.f32 %v2386_v34, %v3372_v12 }
 0x726   :  { %2387 = vtanh.f32 %v1609_v45 }
 0x733   :  { %v2388_v35 = vpop.eup %2387 }
 0x734   :  { %v1612_v48 = vmul.f32 %v2388_v35, %v1611_v41 }
 0x736   :  { %v1614_v56 = vadd.f32 %v1613_v36, %v1612_v48 }
 0x738   :  { %1686 = vmatmul.mubr.f32.vlgmr.msra.gmra.mxu0 %v1614_v56  ;;  %2307 = vmatmul.mubr.f32.vlgmr.msra.gmra.mxu1 %v1614_v56 }
 0x7f8   :  { %v1687_v37 = vpop.f32.mrf.mxu0  ;;  %v1758_v9 = vpop.f32.mrf.mxu1 }
 0x7f9   :  { %v1762_v47 = vadd.f32 %v1687_v37, %v3545_v38  ;;  %v1776_v57 = vadd.f32 %v2447_v42, %v1758_v9 }
 0x7fa   :  { %v2308_v19 = vpop.f32.mrf.mxu1  ;;  %v1689_v21 = vpop.f32.mrf.mxu0 }
 0x7fb   :  { %v1823_v20 = vmul.f32 -1.442695, %v1762_v47  ;;  %v1769_v16 = vadd.f32 %v1689_v21, %v3546_v23 }
 0x7fd   :  { %2389 = vpow2.f32 %v1823_v20  ;;  %v1824_v39 = vmul.f32 -1.442695, %v1769_v16 }
 0x7ff   :  { %2391 = vpow2.f32 %v1824_v39 }
 0x80a   :  { %v2390_v46 = vpop.eup %2389 }
 0x80b   :  { %v1766_v49 = vadd.f32 1.0, %v2390_v46 }
 0x80c   :  { %v2392_v53 = vpop.eup %2391 }
 0x80d   :  { %2393 = vrcp.f32 %v1766_v49  ;;  %v1773_v55 = vadd.f32 1.0, %v2392_v53 }
 0x80f   :  { %2395 = vrcp.f32 %v1773_v55 }
 0x81a   :  { %v2394_v58 = vpop.eup %2393 }
 0x81b   :  { %v1777_v59 = vmul.f32 %v2394_v58, %v1776_v57 }
 0x81c   :  { %v2396_v51 = vpop.eup %2395 }
 0x81d   :  { %v1778_v63 = vadd.f32 %v1777_v59, %v3547_v61  ;;  %v1780_v2 = vsub.f32 1.0, %v2396_v51  ;;  %v1782_v15 = vmul.f32 %v2396_v51, %v1614_v56 }
 0x81f   :  { %2397 = vtanh.f32 %v1778_v63 }
 0x82c   :  { %v2398_v13 = vpop.eup %2397 }
 0x82d   :  { %v1781_v14 = vmul.f32 %v2398_v13, %v1780_v2 }
 0x82f   :  { %v1783_v17 = vadd.f32 %v1782_v15, %v1781_v14 }
 0x831   :  { %1784 = vst [vmem:[#allocation9] sm:$0xff] %v1783_v17 }
 0x832   :  { %2519 = shalt.err (!%p2516_p5)
}
 0x833   :  { %1794 = dma.vmem_to_hbm [thread:$0]  %s1792_s14, 128, %s3459_s5, [#allocation5]  }
 0x834   :  { %2532 = dma.done.wait [#allocation5], 128  }
 0x835   :  { %2533 = vsyncadd [#allocation5], 4294967168 }
 0x836   :  { %1798 = vsyncpa [#allocation4], 1 }
 0x837   :  { %1799 = vsyncpa [#allocation7], 1 }
 0x838   :  { %1800 = vsyncpa [#allocation5], 1 }

</bundles_post_ra>
